<compile_context>
chip_gen: v7x
topology: tpu7x:2x2x1
jax: 0.10.0
libtpu: 0.0.40
codegen_flags: <defaults>
</compile_context>

<pallas_src>
import functools

import jax
import jax.numpy as jnp
from jax.experimental import pallas as pl
from jax.experimental.pallas import tpu as pltpu

_VMEM_LIMIT = 48 * 1024 * 1024   # safe on v7x (64 MiB phys), raises v6e default
_LN_EPS = 1e-5
_TILE_M = 512                    # row tile for matmul/MLP kernels (mult of 8)


def _tile_rows(m, target=_TILE_M):
    # Full-extent block when small (always legal); otherwise a fixed multiple
    # of 8 — Pallas masks the ragged tail block.
    return m if m <= target else target


def _layernorm_f32(x, g_ref, b_ref, eps=_LN_EPS):
    xf = x.astype(jnp.float32)
    mu = jnp.mean(xf, axis=-1, keepdims=True)
    var = jnp.mean((xf - mu) * (xf - mu), axis=-1, keepdims=True)
    xn = (xf - mu) * jax.lax.rsqrt(var + eps)
    return xn * g_ref[...].astype(jnp.float32) + b_ref[...].astype(jnp.float32)


# ----------------------------------------------------------------------------
# Fused [LayerNorm] -> matmul -> bias -> [GELU] -> [residual] (-> split) kernel
# ----------------------------------------------------------------------------
def _fused_linear_kernel(*refs, has_ln, has_res, activation, num_splits):
    it = iter(refs)
    x_ref = next(it)
    if has_ln:
        g_ref, lb_ref = next(it), next(it)
    w_ref, b_ref = next(it), next(it)
    r_ref = next(it) if has_res else None
    out_refs = list(it)

    if has_ln:
        x = _layernorm_f32(x_ref[...], g_ref, lb_ref).astype(w_ref.dtype)
    else:
        x = x_ref[...]
    y = jnp.dot(x, w_ref[...], preferred_element_type=jnp.float32)
    y = y + b_ref[...].astype(jnp.float32)
    if activation == "gelu":
        y = jax.nn.gelu(y)
    if has_res:
        y = y + r_ref[...].astype(jnp.float32)

    if num_splits == 1:
        out_refs[0][...] = y.astype(out_refs[0].dtype)
    else:
        n = y.shape[-1] // num_splits
        for j, o_ref in enumerate(out_refs):
            o_ref[...] = y[:, j * n:(j + 1) * n].astype(o_ref.dtype)


def fused_linear(x2d, w, b, *, ln=None, residual=None, activation=None,
                 num_splits=1, tile_m=_TILE_M):
    """y = [res +] act(LN(x) @ w + b).  x2d: (M, K), w: (K, N), b: (N,).

    Row-tiled over M; weight block is index-invariant (stays resident).
    num_splits>1 returns the columns split into `num_splits` equal outputs
    (used for the qkv projection to emit q/k/v directly, lane-dense)."""
    M, K = x2d.shape
    N = w.shape[1]
    tm = _tile_rows(M, tile_m)
    grid = (pl.cdiv(M, tm),)

    in_specs = [pl.BlockSpec((tm, K), lambda i: (i, 0))]
    args = [x2d]
    if ln is not None:
        g, lb = ln
        in_specs += [pl.BlockSpec((1, K), lambda i: (0, 0)),
                     pl.BlockSpec((1, K), lambda i: (0, 0))]
        args += [g.reshape(1, K), lb.reshape(1, K)]
    in_specs += [pl.BlockSpec((K, N), lambda i: (0, 0)),
                 pl.BlockSpec((1, N), lambda i: (0, 0))]
    args += [w, b.reshape(1, N)]
    if residual is not None:
        in_specs += [pl.BlockSpec((tm, N), lambda i: (i, 0))]
        args += [residual]

    if num_splits == 1:
        out_shape = jax.ShapeDtypeStruct((M, N), x2d.dtype)
        out_specs = pl.BlockSpec((tm, N), lambda i: (i, 0))
    else:
        n_out = N // num_splits
        out_shape = tuple(jax.ShapeDtypeStruct((M, n_out), x2d.dtype)
                          for _ in range(num_splits))
        out_specs = tuple(pl.BlockSpec((tm, n_out), lambda i: (i, 0))
                          for _ in range(num_splits))

    return pl.pallas_call(
        functools.partial(_fused_linear_kernel, has_ln=ln is not None,
                          has_res=residual is not None, activation=activation,
                          num_splits=num_splits),
        out_shape=out_shape,
        grid=grid,
        in_specs=in_specs,
        out_specs=out_specs,
        compiler_params=pltpu.CompilerParams(
            dimension_semantics=("parallel",),
            vmem_limit_bytes=_VMEM_LIMIT),
    )(*args)


# ----------------------------------------------------------------------------
# Fused pre-norm MLP chain:  out = x + MLP(LN(x)); intermediates stay in VMEM
# ----------------------------------------------------------------------------
def _fused_mlp_kernel(*refs, n_layers):
    x_ref, g_ref, lb_ref = refs[0], refs[1], refs[2]
    wb = refs[3:3 + 2 * n_layers]
    o_ref = refs[3 + 2 * n_layers]

    xf = x_ref[...].astype(jnp.float32)
    y = _layernorm_f32(x_ref[...], g_ref, lb_ref)
    for i in range(n_layers):
        w_ref, b_ref = wb[2 * i], wb[2 * i + 1]
        y = jnp.dot(y.astype(w_ref.dtype), w_ref[...],
                    preferred_element_type=jnp.float32)
        y = y + b_ref[...].astype(jnp.float32)
        if i < n_layers - 1:
            y = jax.nn.gelu(y)
    o_ref[...] = (xf + y).astype(o_ref.dtype)


def fused_mlp(x2d, gamma, beta, layers, *, tile_m=_TILE_M):
    """x + MLP(LN(x)) with the full ff_hidden_dims chain in one kernel."""
    M, D = x2d.shape
    tm = _tile_rows(M, tile_m)
    grid = (pl.cdiv(M, tm),)

    in_specs = [pl.BlockSpec((tm, D), lambda i: (i, 0)),
                pl.BlockSpec((1, D), lambda i: (0, 0)),
                pl.BlockSpec((1, D), lambda i: (0, 0))]
    args = [x2d, gamma.reshape(1, D), beta.reshape(1, D)]
    for w, b in layers:
        kin, kout = w.shape
        in_specs += [pl.BlockSpec((kin, kout), lambda i: (0, 0)),
                     pl.BlockSpec((1, kout), lambda i: (0, 0))]
        args += [w, b.reshape(1, kout)]

    return pl.pallas_call(
        functools.partial(_fused_mlp_kernel, n_layers=len(layers)),
        out_shape=jax.ShapeDtypeStruct((M, D), x2d.dtype),
        grid=grid,
        in_specs=in_specs,
        out_specs=pl.BlockSpec((tm, D), lambda i: (i, 0)),
        compiler_params=pltpu.CompilerParams(
            dimension_semantics=("parallel",),
            vmem_limit_bytes=_VMEM_LIMIT),
    )(*args)


# ----------------------------------------------------------------------------
# Attention: all heads per grid step, lane-dense (S, D) input & output
# ----------------------------------------------------------------------------
def _attention_kernel(q_ref, k_ref, v_ref, o_ref, *, num_heads, scale):
    D = q_ref.shape[2]
    dh = D // num_heads
    q = q_ref[0]          # (S, D)  heads concatenated along lanes
    k = k_ref[0]
    v = v_ref[0]
    outs = []
    for h in range(num_heads):          # static unroll; plain 2-D MXU dots
        qh = q[:, h * dh:(h + 1) * dh]
        kh = k[:, h * dh:(h + 1) * dh]
        vh = v[:, h * dh:(h + 1) * dh]
        s = jax.lax.dot_general(qh, kh, (((1,), (1,)), ((), ())),
                                preferred_element_type=jnp.float32) * scale
        m = jnp.max(s, axis=-1, keepdims=True)
        p = jnp.exp(s - m)
        p = p * pl.reciprocal(jnp.sum(p, axis=-1, keepdims=True), approx=True)
        oh = jax.lax.dot_general(p.astype(vh.dtype), vh,
                                 (((1,), (0,)), ((), ())),
                                 preferred_element_type=jnp.float32)
        outs.append(oh)
    o_ref[0] = jnp.concatenate(outs, axis=-1).astype(o_ref.dtype)  # (S, D)


def attention(q, k, v, *, num_heads, scale):
    """softmax(QK^T * scale) V for all heads of one batch per grid step.
    q/k/v/out: (B, S, D) with D = num_heads * head_dim (lane-dense)."""
    B, S, D = q.shape
    spec = pl.BlockSpec((1, S, D), lambda b: (b, 0, 0))
    # TODO(synk): for large S (point clouds with thousands of points) switch to
    # flash-style online-softmax tiling over the KV axis; full (S,S) scores are
    # materialized here which is only appropriate for moderate S.
    return pl.pallas_call(
        functools.partial(_attention_kernel, num_heads=num_heads, scale=scale),
        out_shape=jax.ShapeDtypeStruct((B, S, D), q.dtype),
        grid=(B,),
        in_specs=[spec, spec, spec],
        out_specs=pl.BlockSpec((1, S, D), lambda b: (b, 0, 0)),
        compiler_params=pltpu.CompilerParams(
            dimension_semantics=("parallel",),
            vmem_limit_bytes=_VMEM_LIMIT),
    )(q, k, v)


# ----------------------------------------------------------------------------
# Parameter init (deterministic, trunc_normal std=0.02 like the PyTorch module)
# ----------------------------------------------------------------------------
def _trunc_normal(key, shape, std=0.02, dtype=jnp.bfloat16):
    return (std * jax.random.truncated_normal(key, -2.0, 2.0, shape)).astype(dtype)


def init_params(key, *, in_chans, embed_dim, depth, ff_hidden_dims, num_tokens,
                num_classes, dtype=jnp.bfloat16):
    D = embed_dim
    keys = iter(jax.random.split(key, 8 + depth * (4 + len(ff_hidden_dims))))
    nk = lambda: next(keys)
    params = {
        "cls_token": _trunc_normal(nk(), (1, 1, D), dtype=dtype),
        "pos_embed": _trunc_normal(nk(), (1, num_tokens, D), dtype=dtype),
        "patch_w": _trunc_normal(nk(), (in_chans, D), dtype=dtype),
        "patch_b": jnp.zeros((D,), dtype),
        "norm_g": jnp.ones((D,), dtype),
        "norm_b": jnp.zeros((D,), dtype),
        "head_w": _trunc_normal(nk(), (D, num_classes), dtype=dtype),
        "head_b": jnp.zeros((num_classes,), dtype),
        "blocks": [],
    }
    mlp_dims = [D] + list(ff_hidden_dims) + [D]
    for _ in range(depth):
        blk = {
            "ln1_g": jnp.ones((D,), dtype),
            "ln1_b": jnp.zeros((D,), dtype),
            "qkv_w": _trunc_normal(nk(), (D, 3 * D), dtype=dtype),
            "qkv_b": jnp.zeros((3 * D,), dtype),
            "proj_w": _trunc_normal(nk(), (D, D), dtype=dtype),
            "proj_b": jnp.zeros((D,), dtype),
            "ln2_g": jnp.ones((D,), dtype),
            "ln2_b": jnp.zeros((D,), dtype),
            "mlp": [(_trunc_normal(nk(), (mlp_dims[i], mlp_dims[i + 1]), dtype=dtype),
                     jnp.zeros((mlp_dims[i + 1],), dtype))
                    for i in range(len(mlp_dims) - 1)],
        }
        params["blocks"].append(blk)
    return params


# ----------------------------------------------------------------------------
# Forward pass
# ----------------------------------------------------------------------------
def encoder_block(p, h2d, B, S, D, num_heads):
    # ---- MHSA (pre-norm); LN fused into qkv, residual fused into proj ----
    q, k, v = fused_linear(h2d, p["qkv_w"], p["qkv_b"],
                           ln=(p["ln1_g"], p["ln1_b"]), num_splits=3)
    o = attention(q.reshape(B, S, D), k.reshape(B, S, D), v.reshape(B, S, D),
                  num_heads=num_heads, scale=1.0 / ((D // num_heads) ** 0.5))
    h2d = fused_linear(o.reshape(B * S, D), p["proj_w"], p["proj_b"],
                       residual=h2d)
    # ---- Feed-forward chain (pre-norm, GELU between), fully fused ----
    h2d = fused_mlp(h2d, p["ln2_g"], p["ln2_b"], p["mlp"])
    return h2d


def point_vit_forward(params, x, *, num_heads):
    B, N, Cin = x.shape
    D = params["cls_token"].shape[-1]
    dtype = params["cls_token"].dtype
    S = N + 1
    assert params["pos_embed"].shape[1] == S, "pos_embed built for different N"

    # patch_embed: Linear(in_chans -> embed_dim) on each point (row-tiled)
    h = fused_linear(x.reshape(B * N, Cin).astype(dtype),
                     params["patch_w"], params["patch_b"]).reshape(B, N, D)

    # cls token + positional embedding (cheap glue stays in XLA)
    cls = jnp.broadcast_to(params["cls_token"], (B, 1, D))
    h = jnp.concatenate([cls, h], axis=1) + params["pos_embed"]
    # dropout(drop_rate=0.1): identity at inference time.
    h2d = h.reshape(B * S, D).astype(dtype)

    for blk in params["blocks"]:
        h2d = encoder_block(blk, h2d, B, S, D, num_heads)

    # Final LayerNorm + head on the B cls rows only; head padded to 128 lanes
    cls_out = h2d.reshape(B, S, D)[:, 0]                       # (B, D)
    n_cls = params["head_w"].shape[1]
    n_pad = ((n_cls + 127) // 128) * 128
    hw = jnp.pad(params["head_w"], ((0, 0), (0, n_pad - n_cls)))
    hb = jnp.pad(params["head_b"], (0, n_pad - n_cls))
    logits = fused_linear(cls_out, hw, hb,
                          ln=(params["norm_g"], params["norm_b"]))
    return logits[:, :n_cls]


# TODO(synk): the reference `Encoder` class and patch_embed/pos_embed definitions
# are not provided in the PyTorch source; a standard pre-norm ViT encoder with a
# GELU MLP over ff_hidden_dims is implemented here.

if __name__ == "__main__":
    # Small, module-consistent shapes.
    B, N, IN_CHANS = 2, 8, 3
    EMBED_DIM, DEPTH, NUM_HEADS = 32, 2, 4
    FF_HIDDEN_DIMS = [16, 32]
    NUM_CLASSES = 10

    key = jax.random.PRNGKey(0)
    k_param, k_x = jax.random.split(key)

    params = init_params(
        k_param,
        in_chans=IN_CHANS,
        embed_dim=EMBED_DIM,
        depth=DEPTH,
        ff_hidden_dims=FF_HIDDEN_DIMS,
        num_tokens=N + 1,
        num_classes=NUM_CLASSES,
        dtype=jnp.bfloat16,
    )
    x = jax.random.normal(k_x, (B, N, IN_CHANS), dtype=jnp.float32)

    fwd = jax.jit(functools.partial(point_vit_forward, num_heads=NUM_HEADS))
    logits = fwd(params, x)
    jax.block_until_ready(logits)

    assert logits.shape == (B, NUM_CLASSES)
    assert jnp.all(jnp.isfinite(logits.astype(jnp.float32)))
    print("KERNEL_OK")
</pallas_src>

<mosaic_0001>
module attributes {stable_mosaic.version = 11 : i64} {
  func.func @_fused_linear_kernel(%arg0: i32, %arg1: memref<16x3xbf16, #tpu.memory_space<vmem>>, %arg2: memref<3x32xbf16, #tpu.memory_space<vmem>>, %arg3: memref<1x32xbf16, #tpu.memory_space<vmem>>, %arg4: memref<16x32xbf16, #tpu.memory_space<vmem>>) attributes {dimension_semantics = [#tpu.dimension_semantics<parallel>], iteration_bounds = array<i64: 1>, scalar_prefetch = 0 : i64, scratch_operands = 0 : i64, tpu.core_type = #tpu.core_type<tc>, window_params = [{transform_indices = @transform_0, window_bounds = array<i64: 16, 3>}, {pipeline_mode = #tpu.pipeline_mode<synchronous>, transform_indices = @transform_1, window_bounds = array<i64: 3, 32>}, {pipeline_mode = #tpu.pipeline_mode<synchronous>, transform_indices = @transform_2, window_bounds = array<i64: 1, 32>}, {transform_indices = @transform_3, window_bounds = array<i64: 16, 32>}]} {
    %c0 = arith.constant 0 : index
    %c0_0 = arith.constant 0 : index
    %0 = vector.load %arg1[%c0, %c0_0] : memref<16x3xbf16, #tpu.memory_space<vmem>>, vector<16x3xbf16>
    %c0_1 = arith.constant 0 : index
    %c0_2 = arith.constant 0 : index
    %1 = vector.load %arg2[%c0_1, %c0_2] : memref<3x32xbf16, #tpu.memory_space<vmem>>, vector<3x32xbf16>
    %cst = arith.constant dense<0.000000e+00> : vector<16x32xf32>
    %2 = tpu.matmul %0, %1, %cst {dimension_numbers = #tpu.dot_dimension_numbers<[1], [0], [0], [1], [0, 0, 1, 1], [], []>} : vector<16x3xbf16>, vector<3x32xbf16>, vector<16x32xf32> -> vector<16x32xf32>
    %c0_3 = arith.constant 0 : index
    %c0_4 = arith.constant 0 : index
    %3 = vector.load %arg3[%c0_3, %c0_4] : memref<1x32xbf16, #tpu.memory_space<vmem>>, vector<1x32xbf16>
    %4 = arith.extf %3 : vector<1x32xbf16> to vector<1x32xf32>
    %5 = vector.broadcast %4 : vector<1x32xf32> to vector<16x32xf32>
    %6 = arith.addf %2, %5 : vector<16x32xf32>
    %7 = arith.truncf %6 : vector<16x32xf32> to vector<16x32xbf16>
    %c0_5 = arith.constant 0 : index
    %c0_6 = arith.constant 0 : index
    %8 = vector.load %arg4[%c0_5, %c0_6] : memref<16x32xbf16, #tpu.memory_space<vmem>>, vector<16x32xbf16>
    tpu.vector_store %arg4[%c0_5, %c0_6], %7 {strides = array<i32>} : memref<16x32xbf16, #tpu.memory_space<vmem>>, vector<16x32xbf16>,
    return
  }
  func.func @transform_0(%arg0: i32) -> (i32, i32) {
    %c0_i32 = arith.constant 0 : i32
    %c0_i32_0 = arith.constant 0 : i32
    return %arg0, %c0_i32 : i32, i32
  }
  func.func @transform_1(%arg0: i32) -> (i32, i32) {
    %c0_i32 = arith.constant 0 : i32
    %c0_i32_0 = arith.constant 0 : i32
    %c0_i32_1 = arith.constant 0 : i32
    return %c0_i32, %c0_i32_0 : i32, i32
  }
  func.func @transform_2(%arg0: i32) -> (i32, i32) {
    %c0_i32 = arith.constant 0 : i32
    %c0_i32_0 = arith.constant 0 : i32
    %c0_i32_1 = arith.constant 0 : i32
    return %c0_i32, %c0_i32_0 : i32, i32
  }
  func.func @transform_3(%arg0: i32) -> (i32, i32) {
    %c0_i32 = arith.constant 0 : i32
    %c0_i32_0 = arith.constant 0 : i32
    return %arg0, %c0_i32 : i32, i32
  }
}

module attributes {stable_mosaic.version = 11 : i64} {
  func.func @_fused_linear_kernel(%arg0: i32, %arg1: memref<18x32xbf16, #tpu.memory_space<vmem>>, %arg2: memref<1x32xbf16, #tpu.memory_space<vmem>>, %arg3: memref<1x32xbf16, #tpu.memory_space<vmem>>, %arg4: memref<32x96xbf16, #tpu.memory_space<vmem>>, %arg5: memref<1x96xbf16, #tpu.memory_space<vmem>>, %arg6: memref<18x32xbf16, #tpu.memory_space<vmem>>, %arg7: memref<18x32xbf16, #tpu.memory_space<vmem>>, %arg8: memref<18x32xbf16, #tpu.memory_space<vmem>>) attributes {dimension_semantics = [#tpu.dimension_semantics<parallel>], iteration_bounds = array<i64: 1>, scalar_prefetch = 0 : i64, scratch_operands = 0 : i64, tpu.core_type = #tpu.core_type<tc>, window_params = [{transform_indices = @transform_0, window_bounds = array<i64: 18, 32>}, {pipeline_mode = #tpu.pipeline_mode<synchronous>, transform_indices = @transform_1, window_bounds = array<i64: 1, 32>}, {pipeline_mode = #tpu.pipeline_mode<synchronous>, transform_indices = @transform_2, window_bounds = array<i64: 1, 32>}, {pipeline_mode = #tpu.pipeline_mode<synchronous>, transform_indices = @transform_3, window_bounds = array<i64: 32, 96>}, {pipeline_mode = #tpu.pipeline_mode<synchronous>, transform_indices = @transform_4, window_bounds = array<i64: 1, 96>}, {transform_indices = @transform_5, window_bounds = array<i64: 18, 32>}, {transform_indices = @transform_6, window_bounds = array<i64: 18, 32>}, {transform_indices = @transform_7, window_bounds = array<i64: 18, 32>}]} {
    %c0 = arith.constant 0 : index
    %c0_0 = arith.constant 0 : index
    %0 = vector.load %arg1[%c0, %c0_0] : memref<18x32xbf16, #tpu.memory_space<vmem>>, vector<18x32xbf16>
    %1 = arith.extf %0 : vector<18x32xbf16> to vector<18x32xf32>
    %cst = arith.constant dense<0.000000e+00> : vector<18xf32>
    %2 = vector.multi_reduction <add>, %1, %cst [1] : vector<18x32xf32> to vector<18xf32>
    %3 = vector.shape_cast %2 : vector<18xf32> to vector<18x1xf32>
    %cst_1 = arith.constant 3.200000e+01 : f32
    %4 = vector.broadcast %cst_1 : f32 to vector<18x1xf32>
    %5 = arith.divf %3, %4 : vector<18x1xf32>
    %6 = vector.broadcast %5 : vector<18x1xf32> to vector<18x32xf32>
    %7 = arith.subf %1, %6 : vector<18x32xf32>
    %8 = vector.broadcast %5 : vector<18x1xf32> to vector<18x32xf32>
    %9 = arith.subf %1, %8 : vector<18x32xf32>
    %10 = arith.mulf %7, %9 : vector<18x32xf32>
    %cst_2 = arith.constant dense<0.000000e+00> : vector<18xf32>
    %11 = vector.multi_reduction <add>, %10, %cst_2 [1] : vector<18x32xf32> to vector<18xf32>
    %12 = vector.shape_cast %11 : vector<18xf32> to vector<18x1xf32>
    %cst_3 = arith.constant 3.200000e+01 : f32
    %13 = vector.broadcast %cst_3 : f32 to vector<18x1xf32>
    %14 = arith.divf %12, %13 : vector<18x1xf32>
    %15 = vector.broadcast %5 : vector<18x1xf32> to vector<18x32xf32>
    %16 = arith.subf %1, %15 : vector<18x32xf32>
    %cst_4 = arith.constant 9.99999974E-6 : f32
    %17 = vector.broadcast %cst_4 : f32 to vector<18x1xf32>
    %18 = arith.addf %14, %17 : vector<18x1xf32>
    %19 = math.rsqrt %18 : vector<18x1xf32>
    %20 = vector.broadcast %19 : vector<18x1xf32> to vector<18x32xf32>
    %21 = arith.mulf %16, %20 : vector<18x32xf32>
    %c0_5 = arith.constant 0 : index
    %c0_6 = arith.constant 0 : index
    %22 = vector.load %arg2[%c0_5, %c0_6] : memref<1x32xbf16, #tpu.memory_space<vmem>>, vector<1x32xbf16>
    %23 = arith.extf %22 : vector<1x32xbf16> to vector<1x32xf32>
    %24 = vector.broadcast %23 : vector<1x32xf32> to vector<18x32xf32>
    %25 = arith.mulf %21, %24 : vector<18x32xf32>
    %c0_7 = arith.constant 0 : index
    %c0_8 = arith.constant 0 : index
    %26 = vector.load %arg3[%c0_7, %c0_8] : memref<1x32xbf16, #tpu.memory_space<vmem>>, vector<1x32xbf16>
    %27 = arith.extf %26 : vector<1x32xbf16> to vector<1x32xf32>
    %28 = vector.broadcast %27 : vector<1x32xf32> to vector<18x32xf32>
    %29 = arith.addf %25, %28 : vector<18x32xf32>
    %30 = arith.truncf %29 : vector<18x32xf32> to vector<18x32xbf16>
    %c0_9 = arith.constant 0 : index
    %c0_10 = arith.constant 0 : index
    %31 = vector.load %arg4[%c0_9, %c0_10] : memref<32x96xbf16, #tpu.memory_space<vmem>>, vector<32x96xbf16>
    %cst_11 = arith.constant dense<0.000000e+00> : vector<18x96xf32>
    %32 = tpu.matmul %30, %31, %cst_11 {dimension_numbers = #tpu.dot_dimension_numbers<[1], [0], [0], [1], [0, 0, 1, 1], [], []>} : vector<18x32xbf16>, vector<32x96xbf16>, vector<18x96xf32> -> vector<18x96xf32>
    %c0_12 = arith.constant 0 : index
    %c0_13 = arith.constant 0 : index
    %33 = vector.load %arg5[%c0_12, %c0_13] : memref<1x96xbf16, #tpu.memory_space<vmem>>, vector<1x96xbf16>
    %34 = arith.extf %33 : vector<1x96xbf16> to vector<1x96xf32>
    %35 = vector.broadcast %34 : vector<1x96xf32> to vector<18x96xf32>
    %36 = arith.addf %32, %35 : vector<18x96xf32>
    %37 = vector.extract_strided_slice %36 {offsets = [0, 0], sizes = [18, 32], strides = [1, 1]} : vector<18x96xf32> to vector<18x32xf32>
    %38 = arith.truncf %37 : vector<18x32xf32> to vector<18x32xbf16>
    %c0_14 = arith.constant 0 : index
    %c0_15 = arith.constant 0 : index
    %39 = vector.load %arg6[%c0_14, %c0_15] : memref<18x32xbf16, #tpu.memory_space<vmem>>, vector<18x32xbf16>
    tpu.vector_store %arg6[%c0_14, %c0_15], %38 {strides = array<i32>} : memref<18x32xbf16, #tpu.memory_space<vmem>>, vector<18x32xbf16>,
    %40 = vector.extract_strided_slice %36 {offsets = [0, 32], sizes = [18, 32], strides = [1, 1]} : vector<18x96xf32> to vector<18x32xf32>
    %41 = arith.truncf %40 : vector<18x32xf32> to vector<18x32xbf16>
    %c0_16 = arith.constant 0 : index
    %c0_17 = arith.constant 0 : index
    %42 = vector.load %arg7[%c0_16, %c0_17] : memref<18x32xbf16, #tpu.memory_space<vmem>>, vector<18x32xbf16>
    tpu.vector_store %arg7[%c0_16, %c0_17], %41 {strides = array<i32>} : memref<18x32xbf16, #tpu.memory_space<vmem>>, vector<18x32xbf16>,
    %43 = vector.extract_strided_slice %36 {offsets = [0, 64], sizes = [18, 32], strides = [1, 1]} : vector<18x96xf32> to vector<18x32xf32>
    %44 = arith.truncf %43 : vector<18x32xf32> to vector<18x32xbf16>
    %c0_18 = arith.constant 0 : index
    %c0_19 = arith.constant 0 : index
    %45 = vector.load %arg8[%c0_18, %c0_19] : memref<18x32xbf16, #tpu.memory_space<vmem>>, vector<18x32xbf16>
    tpu.vector_store %arg8[%c0_18, %c0_19], %44 {strides = array<i32>} : memref<18x32xbf16, #tpu.memory_space<vmem>>, vector<18x32xbf16>,
    return
  }
  func.func @transform_0(%arg0: i32) -> (i32, i32) {
    %c0_i32 = arith.constant 0 : i32
    %c0_i32_0 = arith.constant 0 : i32
    return %arg0, %c0_i32 : i32, i32
  }
  func.func @transform_1(%arg0: i32) -> (i32, i32) {
    %c0_i32 = arith.constant 0 : i32
    %c0_i32_0 = arith.constant 0 : i32
    %c0_i32_1 = arith.constant 0 : i32
    return %c0_i32, %c0_i32_0 : i32, i32
  }
  func.func @transform_2(%arg0: i32) -> (i32, i32) {
    %c0_i32 = arith.constant 0 : i32
    %c0_i32_0 = arith.constant 0 : i32
    %c0_i32_1 = arith.constant 0 : i32
    return %c0_i32, %c0_i32_0 : i32, i32
  }
  func.func @transform_3(%arg0: i32) -> (i32, i32) {
    %c0_i32 = arith.constant 0 : i32
    %c0_i32_0 = arith.constant 0 : i32
    %c0_i32_1 = arith.constant 0 : i32
    return %c0_i32, %c0_i32_0 : i32, i32
  }
  func.func @transform_4(%arg0: i32) -> (i32, i32) {
    %c0_i32 = arith.constant 0 : i32
    %c0_i32_0 = arith.constant 0 : i32
    %c0_i32_1 = arith.constant 0 : i32
    return %c0_i32, %c0_i32_0 : i32, i32
  }
  func.func @transform_5(%arg0: i32) -> (i32, i32) {
    %c0_i32 = arith.constant 0 : i32
    %c0_i32_0 = arith.constant 0 : i32
    return %arg0, %c0_i32 : i32, i32
  }
  func.func @transform_6(%arg0: i32) -> (i32, i32) {
    %c0_i32 = arith.constant 0 : i32
    %c0_i32_0 = arith.constant 0 : i32
    return %arg0, %c0_i32 : i32, i32
  }
  func.func @transform_7(%arg0: i32) -> (i32, i32) {
    %c0_i32 = arith.constant 0 : i32
    %c0_i32_0 = arith.constant 0 : i32
    return %arg0, %c0_i32 : i32, i32
  }
}

module attributes {stable_mosaic.version = 11 : i64} {
  func.func @_attention_kernel(%arg0: i32, %arg1: memref<1x9x32xbf16, #tpu.memory_space<vmem>>, %arg2: memref<1x9x32xbf16, #tpu.memory_space<vmem>>, %arg3: memref<1x9x32xbf16, #tpu.memory_space<vmem>>, %arg4: memref<1x9x32xbf16, #tpu.memory_space<vmem>>) attributes {dimension_semantics = [#tpu.dimension_semantics<parallel>], iteration_bounds = array<i64: 2>, scalar_prefetch = 0 : i64, scratch_operands = 0 : i64, tpu.core_type = #tpu.core_type<tc>, window_params = [{transform_indices = @transform_0, window_bounds = array<i64: 1, 9, 32>}, {transform_indices = @transform_1, window_bounds = array<i64: 1, 9, 32>}, {transform_indices = @transform_2, window_bounds = array<i64: 1, 9, 32>}, {transform_indices = @transform_3, window_bounds = array<i64: 1, 9, 32>}]} {
    %c0 = arith.constant 0 : index
    %c0_0 = arith.constant 0 : index
    %c0_1 = arith.constant 0 : index
    %0 = vector.load %arg1[%c0, %c0_0, %c0_1] : memref<1x9x32xbf16, #tpu.memory_space<vmem>>, vector<1x9x32xbf16>
    %1 = vector.shape_cast %0 : vector<1x9x32xbf16> to vector<9x32xbf16>
    %c0_2 = arith.constant 0 : index
    %c0_3 = arith.constant 0 : index
    %c0_4 = arith.constant 0 : index
    %2 = vector.load %arg2[%c0_2, %c0_3, %c0_4] : memref<1x9x32xbf16, #tpu.memory_space<vmem>>, vector<1x9x32xbf16>
    %3 = vector.shape_cast %2 : vector<1x9x32xbf16> to vector<9x32xbf16>
    %c0_5 = arith.constant 0 : index
    %c0_6 = arith.constant 0 : index
    %c0_7 = arith.constant 0 : index
    %4 = vector.load %arg3[%c0_5, %c0_6, %c0_7] : memref<1x9x32xbf16, #tpu.memory_space<vmem>>, vector<1x9x32xbf16>
    %5 = vector.shape_cast %4 : vector<1x9x32xbf16> to vector<9x32xbf16>
    %6 = vector.extract_strided_slice %1 {offsets = [0, 0], sizes = [9, 8], strides = [1, 1]} : vector<9x32xbf16> to vector<9x8xbf16>
    %7 = vector.extract_strided_slice %3 {offsets = [0, 0], sizes = [9, 8], strides = [1, 1]} : vector<9x32xbf16> to vector<9x8xbf16>
    %8 = vector.extract_strided_slice %5 {offsets = [0, 0], sizes = [9, 8], strides = [1, 1]} : vector<9x32xbf16> to vector<9x8xbf16>
    %cst = arith.constant dense<0.000000e+00> : vector<9x9xf32>
    %9 = tpu.matmul %6, %7, %cst {dimension_numbers = #tpu.dot_dimension_numbers<[1], [1], [0], [0], [0, 0, 1, 0], [], []>} : vector<9x8xbf16>, vector<9x8xbf16>, vector<9x9xf32> -> vector<9x9xf32>
    %cst_8 = arith.constant 0.353553385 : f32
    %10 = vector.broadcast %cst_8 : f32 to vector<9x9xf32>
    %11 = arith.mulf %9, %10 : vector<9x9xf32>
    %cst_9 = arith.constant dense<0xFF800000> : vector<9xf32>
    %12 = vector.multi_reduction <maximumf>, %11, %cst_9 [1] : vector<9x9xf32> to vector<9xf32>
    %13 = vector.shape_cast %12 : vector<9xf32> to vector<9x1xf32>
    %14 = vector.broadcast %13 : vector<9x1xf32> to vector<9x9xf32>
    %15 = arith.subf %11, %14 : vector<9x9xf32>
    %16 = math.exp %15 : vector<9x9xf32>
    %cst_10 = arith.constant dense<0.000000e+00> : vector<9xf32>
    %17 = vector.multi_reduction <add>, %16, %cst_10 [1] : vector<9x9xf32> to vector<9xf32>
    %18 = vector.shape_cast %17 : vector<9xf32> to vector<9x1xf32>
    %19 = tpu.reciprocal %18 {approx = true} : vector<9x1xf32> -> vector<9x1xf32>
    %20 = vector.broadcast %19 : vector<9x1xf32> to vector<9x9xf32>
    %21 = arith.mulf %16, %20 : vector<9x9xf32>
    %22 = arith.truncf %21 : vector<9x9xf32> to vector<9x9xbf16>
    %cst_11 = arith.constant dense<0.000000e+00> : vector<9x8xf32>
    %23 = tpu.matmul %22, %8, %cst_11 {dimension_numbers = #tpu.dot_dimension_numbers<[1], [0], [0], [1], [0, 0, 1, 1], [], []>} : vector<9x9xbf16>, vector<9x8xbf16>, vector<9x8xf32> -> vector<9x8xf32>
    %24 = vector.extract_strided_slice %1 {offsets = [0, 8], sizes = [9, 8], strides = [1, 1]} : vector<9x32xbf16> to vector<9x8xbf16>
    %25 = vector.extract_strided_slice %3 {offsets = [0, 8], sizes = [9, 8], strides = [1, 1]} : vector<9x32xbf16> to vector<9x8xbf16>
    %26 = vector.extract_strided_slice %5 {offsets = [0, 8], sizes = [9, 8], strides = [1, 1]} : vector<9x32xbf16> to vector<9x8xbf16>
    %cst_12 = arith.constant dense<0.000000e+00> : vector<9x9xf32>
    %27 = tpu.matmul %24, %25, %cst_12 {dimension_numbers = #tpu.dot_dimension_numbers<[1], [1], [0], [0], [0, 0, 1, 0], [], []>} : vector<9x8xbf16>, vector<9x8xbf16>, vector<9x9xf32> -> vector<9x9xf32>
    %cst_13 = arith.constant 0.353553385 : f32
    %28 = vector.broadcast %cst_13 : f32 to vector<9x9xf32>
    %29 = arith.mulf %27, %28 : vector<9x9xf32>
    %cst_14 = arith.constant dense<0xFF800000> : vector<9xf32>
    %30 = vector.multi_reduction <maximumf>, %29, %cst_14 [1] : vector<9x9xf32> to vector<9xf32>
    %31 = vector.shape_cast %30 : vector<9xf32> to vector<9x1xf32>
    %32 = vector.broadcast %31 : vector<9x1xf32> to vector<9x9xf32>
    %33 = arith.subf %29, %32 : vector<9x9xf32>
    %34 = math.exp %33 : vector<9x9xf32>
    %cst_15 = arith.constant dense<0.000000e+00> : vector<9xf32>
    %35 = vector.multi_reduction <add>, %34, %cst_15 [1] : vector<9x9xf32> to vector<9xf32>
    %36 = vector.shape_cast %35 : vector<9xf32> to vector<9x1xf32>
    %37 = tpu.reciprocal %36 {approx = true} : vector<9x1xf32> -> vector<9x1xf32>
    %38 = vector.broadcast %37 : vector<9x1xf32> to vector<9x9xf32>
    %39 = arith.mulf %34, %38 : vector<9x9xf32>
    %40 = arith.truncf %39 : vector<9x9xf32> to vector<9x9xbf16>
    %cst_16 = arith.constant dense<0.000000e+00> : vector<9x8xf32>
    %41 = tpu.matmul %40, %26, %cst_16 {dimension_numbers = #tpu.dot_dimension_numbers<[1], [0], [0], [1], [0, 0, 1, 1], [], []>} : vector<9x9xbf16>, vector<9x8xbf16>, vector<9x8xf32> -> vector<9x8xf32>
    %42 = vector.extract_strided_slice %1 {offsets = [0, 16], sizes = [9, 8], strides = [1, 1]} : vector<9x32xbf16> to vector<9x8xbf16>
    %43 = vector.extract_strided_slice %3 {offsets = [0, 16], sizes = [9, 8], strides = [1, 1]} : vector<9x32xbf16> to vector<9x8xbf16>
    %44 = vector.extract_strided_slice %5 {offsets = [0, 16], sizes = [9, 8], strides = [1, 1]} : vector<9x32xbf16> to vector<9x8xbf16>
    %cst_17 = arith.constant dense<0.000000e+00> : vector<9x9xf32>
    %45 = tpu.matmul %42, %43, %cst_17 {dimension_numbers = #tpu.dot_dimension_numbers<[1], [1], [0], [0], [0, 0, 1, 0], [], []>} : vector<9x8xbf16>, vector<9x8xbf16>, vector<9x9xf32> -> vector<9x9xf32>
    %cst_18 = arith.constant 0.353553385 : f32
    %46 = vector.broadcast %cst_18 : f32 to vector<9x9xf32>
    %47 = arith.mulf %45, %46 : vector<9x9xf32>
    %cst_19 = arith.constant dense<0xFF800000> : vector<9xf32>
    %48 = vector.multi_reduction <maximumf>, %47, %cst_19 [1] : vector<9x9xf32> to vector<9xf32>
    %49 = vector.shape_cast %48 : vector<9xf32> to vector<9x1xf32>
    %50 = vector.broadcast %49 : vector<9x1xf32> to vector<9x9xf32>
    %51 = arith.subf %47, %50 : vector<9x9xf32>
    %52 = math.exp %51 : vector<9x9xf32>
    %cst_20 = arith.constant dense<0.000000e+00> : vector<9xf32>
    %53 = vector.multi_reduction <add>, %52, %cst_20 [1] : vector<9x9xf32> to vector<9xf32>
    %54 = vector.shape_cast %53 : vector<9xf32> to vector<9x1xf32>
    %55 = tpu.reciprocal %54 {approx = true} : vector<9x1xf32> -> vector<9x1xf32>
    %56 = vector.broadcast %55 : vector<9x1xf32> to vector<9x9xf32>
    %57 = arith.mulf %52, %56 : vector<9x9xf32>
    %58 = arith.truncf %57 : vector<9x9xf32> to vector<9x9xbf16>
    %cst_21 = arith.constant dense<0.000000e+00> : vector<9x8xf32>
    %59 = tpu.matmul %58, %44, %cst_21 {dimension_numbers = #tpu.dot_dimension_numbers<[1], [0], [0], [1], [0, 0, 1, 1], [], []>} : vector<9x9xbf16>, vector<9x8xbf16>, vector<9x8xf32> -> vector<9x8xf32>
    %60 = vector.extract_strided_slice %1 {offsets = [0, 24], sizes = [9, 8], strides = [1, 1]} : vector<9x32xbf16> to vector<9x8xbf16>
    %61 = vector.extract_strided_slice %3 {offsets = [0, 24], sizes = [9, 8], strides = [1, 1]} : vector<9x32xbf16> to vector<9x8xbf16>
    %62 = vector.extract_strided_slice %5 {offsets = [0, 24], sizes = [9, 8], strides = [1, 1]} : vector<9x32xbf16> to vector<9x8xbf16>
    %cst_22 = arith.constant dense<0.000000e+00> : vector<9x9xf32>
    %63 = tpu.matmul %60, %61, %cst_22 {dimension_numbers = #tpu.dot_dimension_numbers<[1], [1], [0], [0], [0, 0, 1, 0], [], []>} : vector<9x8xbf16>, vector<9x8xbf16>, vector<9x9xf32> -> vector<9x9xf32>
    %cst_23 = arith.constant 0.353553385 : f32
    %64 = vector.broadcast %cst_23 : f32 to vector<9x9xf32>
    %65 = arith.mulf %63, %64 : vector<9x9xf32>
    %cst_24 = arith.constant dense<0xFF800000> : vector<9xf32>
    %66 = vector.multi_reduction <maximumf>, %65, %cst_24 [1] : vector<9x9xf32> to vector<9xf32>
    %67 = vector.shape_cast %66 : vector<9xf32> to vector<9x1xf32>
    %68 = vector.broadcast %67 : vector<9x1xf32> to vector<9x9xf32>
    %69 = arith.subf %65, %68 : vector<9x9xf32>
    %70 = math.exp %69 : vector<9x9xf32>
    %cst_25 = arith.constant dense<0.000000e+00> : vector<9xf32>
    %71 = vector.multi_reduction <add>, %70, %cst_25 [1] : vector<9x9xf32> to vector<9xf32>
    %72 = vector.shape_cast %71 : vector<9xf32> to vector<9x1xf32>
    %73 = tpu.reciprocal %72 {approx = true} : vector<9x1xf32> -> vector<9x1xf32>
    %74 = vector.broadcast %73 : vector<9x1xf32> to vector<9x9xf32>
    %75 = arith.mulf %70, %74 : vector<9x9xf32>
    %76 = arith.truncf %75 : vector<9x9xf32> to vector<9x9xbf16>
    %cst_26 = arith.constant dense<0.000000e+00> : vector<9x8xf32>
    %77 = tpu.matmul %76, %62, %cst_26 {dimension_numbers = #tpu.dot_dimension_numbers<[1], [0], [0], [1], [0, 0, 1, 1], [], []>} : vector<9x9xbf16>, vector<9x8xbf16>, vector<9x8xf32> -> vector<9x8xf32>
    %78 = tpu.concatenate %23, %41, %59, %77 in 1 : vector<9x8xf32>, vector<9x8xf32>, vector<9x8xf32>, vector<9x8xf32> -> vector<9x32xf32>
    %79 = arith.truncf %78 : vector<9x32xf32> to vector<9x32xbf16>
    %c0_27 = arith.constant 0 : index
    %c0_28 = arith.constant 0 : index
    %c0_29 = arith.constant 0 : index
    %80 = vector.load %arg4[%c0_27, %c0_28, %c0_29] : memref<1x9x32xbf16, #tpu.memory_space<vmem>>, vector<1x9x32xbf16>
    %81 = vector.shape_cast %80 : vector<1x9x32xbf16> to vector<9x32xbf16>
    %82 = vector.shape_cast %79 : vector<9x32xbf16> to vector<1x9x32xbf16>
    tpu.vector_store %arg4[%c0_27, %c0_28, %c0_29], %82 {strides = array<i32>} : memref<1x9x32xbf16, #tpu.memory_space<vmem>>, vector<1x9x32xbf16>,
    return
  }
  func.func @transform_0(%arg0: i32) -> (i32, i32, i32) {
    %c0_i32 = arith.constant 0 : i32
    %c0_i32_0 = arith.constant 0 : i32
    %c0_i32_1 = arith.constant 0 : i32
    return %arg0, %c0_i32, %c0_i32_0 : i32, i32, i32
  }
  func.func @transform_1(%arg0: i32) -> (i32, i32, i32) {
    %c0_i32 = arith.constant 0 : i32
    %c0_i32_0 = arith.constant 0 : i32
    %c0_i32_1 = arith.constant 0 : i32
    return %arg0, %c0_i32, %c0_i32_0 : i32, i32, i32
  }
  func.func @transform_2(%arg0: i32) -> (i32, i32, i32) {
    %c0_i32 = arith.constant 0 : i32
    %c0_i32_0 = arith.constant 0 : i32
    %c0_i32_1 = arith.constant 0 : i32
    return %arg0, %c0_i32, %c0_i32_0 : i32, i32, i32
  }
  func.func @transform_3(%arg0: i32) -> (i32, i32, i32) {
    %c0_i32 = arith.constant 0 : i32
    %c0_i32_0 = arith.constant 0 : i32
    %c0_i32_1 = arith.constant 0 : i32
    return %arg0, %c0_i32, %c0_i32_0 : i32, i32, i32
  }
}

module attributes {stable_mosaic.version = 11 : i64} {
  func.func @_fused_linear_kernel(%arg0: i32, %arg1: memref<18x32xbf16, #tpu.memory_space<vmem>>, %arg2: memref<32x32xbf16, #tpu.memory_space<vmem>>, %arg3: memref<1x32xbf16, #tpu.memory_space<vmem>>, %arg4: memref<18x32xbf16, #tpu.memory_space<vmem>>, %arg5: memref<18x32xbf16, #tpu.memory_space<vmem>>) attributes {dimension_semantics = [#tpu.dimension_semantics<parallel>], iteration_bounds = array<i64: 1>, scalar_prefetch = 0 : i64, scratch_operands = 0 : i64, tpu.core_type = #tpu.core_type<tc>, window_params = [{transform_indices = @transform_0, window_bounds = array<i64: 18, 32>}, {pipeline_mode = #tpu.pipeline_mode<synchronous>, transform_indices = @transform_1, window_bounds = array<i64: 32, 32>}, {pipeline_mode = #tpu.pipeline_mode<synchronous>, transform_indices = @transform_2, window_bounds = array<i64: 1, 32>}, {transform_indices = @transform_3, window_bounds = array<i64: 18, 32>}, {transform_indices = @transform_4, window_bounds = array<i64: 18, 32>}]} {
    %c0 = arith.constant 0 : index
    %c0_0 = arith.constant 0 : index
    %0 = vector.load %arg1[%c0, %c0_0] : memref<18x32xbf16, #tpu.memory_space<vmem>>, vector<18x32xbf16>
    %c0_1 = arith.constant 0 : index
    %c0_2 = arith.constant 0 : index
    %1 = vector.load %arg2[%c0_1, %c0_2] : memref<32x32xbf16, #tpu.memory_space<vmem>>, vector<32x32xbf16>
    %cst = arith.constant dense<0.000000e+00> : vector<18x32xf32>
    %2 = tpu.matmul %0, %1, %cst {dimension_numbers = #tpu.dot_dimension_numbers<[1], [0], [0], [1], [0, 0, 1, 1], [], []>} : vector<18x32xbf16>, vector<32x32xbf16>, vector<18x32xf32> -> vector<18x32xf32>
    %c0_3 = arith.constant 0 : index
    %c0_4 = arith.constant 0 : index
    %3 = vector.load %arg3[%c0_3, %c0_4] : memref<1x32xbf16, #tpu.memory_space<vmem>>, vector<1x32xbf16>
    %4 = arith.extf %3 : vector<1x32xbf16> to vector<1x32xf32>
    %5 = vector.broadcast %4 : vector<1x32xf32> to vector<18x32xf32>
    %6 = arith.addf %2, %5 : vector<18x32xf32>
    %c0_5 = arith.constant 0 : index
    %c0_6 = arith.constant 0 : index
    %7 = vector.load %arg4[%c0_5, %c0_6] : memref<18x32xbf16, #tpu.memory_space<vmem>>, vector<18x32xbf16>
    %8 = arith.extf %7 : vector<18x32xbf16> to vector<18x32xf32>
    %9 = arith.addf %6, %8 : vector<18x32xf32>
    %10 = arith.truncf %9 : vector<18x32xf32> to vector<18x32xbf16>
    %c0_7 = arith.constant 0 : index
    %c0_8 = arith.constant 0 : index
    %11 = vector.load %arg5[%c0_7, %c0_8] : memref<18x32xbf16, #tpu.memory_space<vmem>>, vector<18x32xbf16>
    tpu.vector_store %arg5[%c0_7, %c0_8], %10 {strides = array<i32>} : memref<18x32xbf16, #tpu.memory_space<vmem>>, vector<18x32xbf16>,
    return
  }
  func.func @transform_0(%arg0: i32) -> (i32, i32) {
    %c0_i32 = arith.constant 0 : i32
    %c0_i32_0 = arith.constant 0 : i32
    return %arg0, %c0_i32 : i32, i32
  }
  func.func @transform_1(%arg0: i32) -> (i32, i32) {
    %c0_i32 = arith.constant 0 : i32
    %c0_i32_0 = arith.constant 0 : i32
    %c0_i32_1 = arith.constant 0 : i32
    return %c0_i32, %c0_i32_0 : i32, i32
  }
  func.func @transform_2(%arg0: i32) -> (i32, i32) {
    %c0_i32 = arith.constant 0 : i32
    %c0_i32_0 = arith.constant 0 : i32
    %c0_i32_1 = arith.constant 0 : i32
    return %c0_i32, %c0_i32_0 : i32, i32
  }
  func.func @transform_3(%arg0: i32) -> (i32, i32) {
    %c0_i32 = arith.constant 0 : i32
    %c0_i32_0 = arith.constant 0 : i32
    return %arg0, %c0_i32 : i32, i32
  }
  func.func @transform_4(%arg0: i32) -> (i32, i32) {
    %c0_i32 = arith.constant 0 : i32
    %c0_i32_0 = arith.constant 0 : i32
    return %arg0, %c0_i32 : i32, i32
  }
}

module attributes {stable_mosaic.version = 11 : i64} {
  func.func @_fused_mlp_kernel(%arg0: i32, %arg1: memref<18x32xbf16, #tpu.memory_space<vmem>>, %arg2: memref<1x32xbf16, #tpu.memory_space<vmem>>, %arg3: memref<1x32xbf16, #tpu.memory_space<vmem>>, %arg4: memref<32x16xbf16, #tpu.memory_space<vmem>>, %arg5: memref<1x16xbf16, #tpu.memory_space<vmem>>, %arg6: memref<16x32xbf16, #tpu.memory_space<vmem>>, %arg7: memref<1x32xbf16, #tpu.memory_space<vmem>>, %arg8: memref<32x32xbf16, #tpu.memory_space<vmem>>, %arg9: memref<1x32xbf16, #tpu.memory_space<vmem>>, %arg10: memref<18x32xbf16, #tpu.memory_space<vmem>>) attributes {dimension_semantics = [#tpu.dimension_semantics<parallel>], iteration_bounds = array<i64: 1>, scalar_prefetch = 0 : i64, scratch_operands = 0 : i64, tpu.core_type = #tpu.core_type<tc>, window_params = [{transform_indices = @transform_0, window_bounds = array<i64: 18, 32>}, {pipeline_mode = #tpu.pipeline_mode<synchronous>, transform_indices = @transform_1, window_bounds = array<i64: 1, 32>}, {pipeline_mode = #tpu.pipeline_mode<synchronous>, transform_indices = @transform_2, window_bounds = array<i64: 1, 32>}, {pipeline_mode = #tpu.pipeline_mode<synchronous>, transform_indices = @transform_3, window_bounds = array<i64: 32, 16>}, {pipeline_mode = #tpu.pipeline_mode<synchronous>, transform_indices = @transform_4, window_bounds = array<i64: 1, 16>}, {pipeline_mode = #tpu.pipeline_mode<synchronous>, transform_indices = @transform_5, window_bounds = array<i64: 16, 32>}, {pipeline_mode = #tpu.pipeline_mode<synchronous>, transform_indices = @transform_6, window_bounds = array<i64: 1, 32>}, {pipeline_mode = #tpu.pipeline_mode<synchronous>, transform_indices = @transform_7, window_bounds = array<i64: 32, 32>}, {pipeline_mode = #tpu.pipeline_mode<synchronous>, transform_indices = @transform_8, window_bounds = array<i64: 1, 32>}, {transform_indices = @transform_9, window_bounds = array<i64: 18, 32>}]} {
    %c0 = arith.constant 0 : index
    %c0_0 = arith.constant 0 : index
    %0 = vector.load %arg1[%c0, %c0_0] : memref<18x32xbf16, #tpu.memory_space<vmem>>, vector<18x32xbf16>
    %1 = arith.extf %0 : vector<18x32xbf16> to vector<18x32xf32>
    %c0_1 = arith.constant 0 : index
    %c0_2 = arith.constant 0 : index
    %2 = vector.load %arg1[%c0_1, %c0_2] : memref<18x32xbf16, #tpu.memory_space<vmem>>, vector<18x32xbf16>
    %3 = arith.extf %2 : vector<18x32xbf16> to vector<18x32xf32>
    %cst = arith.constant dense<0.000000e+00> : vector<18xf32>
    %4 = vector.multi_reduction <add>, %3, %cst [1] : vector<18x32xf32> to vector<18xf32>
    %5 = vector.shape_cast %4 : vector<18xf32> to vector<18x1xf32>
    %cst_3 = arith.constant 3.200000e+01 : f32
    %6 = vector.broadcast %cst_3 : f32 to vector<18x1xf32>
    %7 = arith.divf %5, %6 : vector<18x1xf32>
    %8 = vector.broadcast %7 : vector<18x1xf32> to vector<18x32xf32>
    %9 = arith.subf %3, %8 : vector<18x32xf32>
    %10 = vector.broadcast %7 : vector<18x1xf32> to vector<18x32xf32>
    %11 = arith.subf %3, %10 : vector<18x32xf32>
    %12 = arith.mulf %9, %11 : vector<18x32xf32>
    %cst_4 = arith.constant dense<0.000000e+00> : vector<18xf32>
    %13 = vector.multi_reduction <add>, %12, %cst_4 [1] : vector<18x32xf32> to vector<18xf32>
    %14 = vector.shape_cast %13 : vector<18xf32> to vector<18x1xf32>
    %cst_5 = arith.constant 3.200000e+01 : f32
    %15 = vector.broadcast %cst_5 : f32 to vector<18x1xf32>
    %16 = arith.divf %14, %15 : vector<18x1xf32>
    %17 = vector.broadcast %7 : vector<18x1xf32> to vector<18x32xf32>
    %18 = arith.subf %3, %17 : vector<18x32xf32>
    %cst_6 = arith.constant 9.99999974E-6 : f32
    %19 = vector.broadcast %cst_6 : f32 to vector<18x1xf32>
    %20 = arith.addf %16, %19 : vector<18x1xf32>
    %21 = math.rsqrt %20 : vector<18x1xf32>
    %22 = vector.broadcast %21 : vector<18x1xf32> to vector<18x32xf32>
    %23 = arith.mulf %18, %22 : vector<18x32xf32>
    %c0_7 = arith.constant 0 : index
    %c0_8 = arith.constant 0 : index
    %24 = vector.load %arg2[%c0_7, %c0_8] : memref<1x32xbf16, #tpu.memory_space<vmem>>, vector<1x32xbf16>
    %25 = arith.extf %24 : vector<1x32xbf16> to vector<1x32xf32>
    %26 = vector.broadcast %25 : vector<1x32xf32> to vector<18x32xf32>
    %27 = arith.mulf %23, %26 : vector<18x32xf32>
    %c0_9 = arith.constant 0 : index
    %c0_10 = arith.constant 0 : index
    %28 = vector.load %arg3[%c0_9, %c0_10] : memref<1x32xbf16, #tpu.memory_space<vmem>>, vector<1x32xbf16>
    %29 = arith.extf %28 : vector<1x32xbf16> to vector<1x32xf32>
    %30 = vector.broadcast %29 : vector<1x32xf32> to vector<18x32xf32>
    %31 = arith.addf %27, %30 : vector<18x32xf32>
    %32 = arith.truncf %31 : vector<18x32xf32> to vector<18x32xbf16>
    %c0_11 = arith.constant 0 : index
    %c0_12 = arith.constant 0 : index
    %33 = vector.load %arg4[%c0_11, %c0_12] : memref<32x16xbf16, #tpu.memory_space<vmem>>, vector<32x16xbf16>
    %cst_13 = arith.constant dense<0.000000e+00> : vector<18x16xf32>
    %34 = tpu.matmul %32, %33, %cst_13 {dimension_numbers = #tpu.dot_dimension_numbers<[1], [0], [0], [1], [0, 0, 1, 1], [], []>} : vector<18x32xbf16>, vector<32x16xbf16>, vector<18x16xf32> -> vector<18x16xf32>
    %c0_14 = arith.constant 0 : index
    %c0_15 = arith.constant 0 : index
    %35 = vector.load %arg5[%c0_14, %c0_15] : memref<1x16xbf16, #tpu.memory_space<vmem>>, vector<1x16xbf16>
    %36 = arith.extf %35 : vector<1x16xbf16> to vector<1x16xf32>
    %37 = vector.broadcast %36 : vector<1x16xf32> to vector<18x16xf32>
    %38 = arith.addf %34, %37 : vector<18x16xf32>
    %39 = arith.mulf %38, %38 : vector<18x16xf32>
    %40 = arith.mulf %38, %39 : vector<18x16xf32>
    %cst_16 = arith.constant 4.471500e-02 : f32
    %41 = vector.broadcast %cst_16 : f32 to vector<18x16xf32>
    %42 = arith.mulf %41, %40 : vector<18x16xf32>
    %43 = arith.addf %38, %42 : vector<18x16xf32>
    %cst_17 = arith.constant 0.797884583 : f32
    %44 = vector.broadcast %cst_17 : f32 to vector<18x16xf32>
    %45 = arith.mulf %44, %43 : vector<18x16xf32>
    %46 = math.tanh %45 : vector<18x16xf32>
    %cst_18 = arith.constant 1.000000e+00 : f32
    %47 = vector.broadcast %cst_18 : f32 to vector<18x16xf32>
    %48 = arith.addf %47, %46 : vector<18x16xf32>
    %cst_19 = arith.constant 5.000000e-01 : f32
    %49 = vector.broadcast %cst_19 : f32 to vector<18x16xf32>
    %50 = arith.mulf %49, %48 : vector<18x16xf32>
    %51 = arith.mulf %38, %50 : vector<18x16xf32>
    %52 = arith.truncf %51 : vector<18x16xf32> to vector<18x16xbf16>
    %c0_20 = arith.constant 0 : index
    %c0_21 = arith.constant 0 : index
    %53 = vector.load %arg6[%c0_20, %c0_21] : memref<16x32xbf16, #tpu.memory_space<vmem>>, vector<16x32xbf16>
    %cst_22 = arith.constant dense<0.000000e+00> : vector<18x32xf32>
    %54 = tpu.matmul %52, %53, %cst_22 {dimension_numbers = #tpu.dot_dimension_numbers<[1], [0], [0], [1], [0, 0, 1, 1], [], []>} : vector<18x16xbf16>, vector<16x32xbf16>, vector<18x32xf32> -> vector<18x32xf32>
    %c0_23 = arith.constant 0 : index
    %c0_24 = arith.constant 0 : index
    %55 = vector.load %arg7[%c0_23, %c0_24] : memref<1x32xbf16, #tpu.memory_space<vmem>>, vector<1x32xbf16>
    %56 = arith.extf %55 : vector<1x32xbf16> to vector<1x32xf32>
    %57 = vector.broadcast %56 : vector<1x32xf32> to vector<18x32xf32>
    %58 = arith.addf %54, %57 : vector<18x32xf32>
    %59 = arith.mulf %58, %58 : vector<18x32xf32>
    %60 = arith.mulf %58, %59 : vector<18x32xf32>
    %cst_25 = arith.constant 4.471500e-02 : f32
    %61 = vector.broadcast %cst_25 : f32 to vector<18x32xf32>
    %62 = arith.mulf %61, %60 : vector<18x32xf32>
    %63 = arith.addf %58, %62 : vector<18x32xf32>
    %cst_26 = arith.constant 0.797884583 : f32
    %64 = vector.broadcast %cst_26 : f32 to vector<18x32xf32>
    %65 = arith.mulf %64, %63 : vector<18x32xf32>
    %66 = math.tanh %65 : vector<18x32xf32>
    %cst_27 = arith.constant 1.000000e+00 : f32
    %67 = vector.broadcast %cst_27 : f32 to vector<18x32xf32>
    %68 = arith.addf %67, %66 : vector<18x32xf32>
    %cst_28 = arith.constant 5.000000e-01 : f32
    %69 = vector.broadcast %cst_28 : f32 to vector<18x32xf32>
    %70 = arith.mulf %69, %68 : vector<18x32xf32>
    %71 = arith.mulf %58, %70 : vector<18x32xf32>
    %72 = arith.truncf %71 : vector<18x32xf32> to vector<18x32xbf16>
    %c0_29 = arith.constant 0 : index
    %c0_30 = arith.constant 0 : index
    %73 = vector.load %arg8[%c0_29, %c0_30] : memref<32x32xbf16, #tpu.memory_space<vmem>>, vector<32x32xbf16>
    %cst_31 = arith.constant dense<0.000000e+00> : vector<18x32xf32>
    %74 = tpu.matmul %72, %73, %cst_31 {dimension_numbers = #tpu.dot_dimension_numbers<[1], [0], [0], [1], [0, 0, 1, 1], [], []>} : vector<18x32xbf16>, vector<32x32xbf16>, vector<18x32xf32> -> vector<18x32xf32>
    %c0_32 = arith.constant 0 : index
    %c0_33 = arith.constant 0 : index
    %75 = vector.load %arg9[%c0_32, %c0_33] : memref<1x32xbf16, #tpu.memory_space<vmem>>, vector<1x32xbf16>
    %76 = arith.extf %75 : vector<1x32xbf16> to vector<1x32xf32>
    %77 = vector.broadcast %76 : vector<1x32xf32> to vector<18x32xf32>
    %78 = arith.addf %74, %77 : vector<18x32xf32>
    %79 = arith.addf %1, %78 : vector<18x32xf32>
    %80 = arith.truncf %79 : vector<18x32xf32> to vector<18x32xbf16>
    %c0_34 = arith.constant 0 : index
    %c0_35 = arith.constant 0 : index
    %81 = vector.load %arg10[%c0_34, %c0_35] : memref<18x32xbf16, #tpu.memory_space<vmem>>, vector<18x32xbf16>
    tpu.vector_store %arg10[%c0_34, %c0_35], %80 {strides = array<i32>} : memref<18x32xbf16, #tpu.memory_space<vmem>>, vector<18x32xbf16>,
    return
  }
  func.func @transform_0(%arg0: i32) -> (i32, i32) {
    %c0_i32 = arith.constant 0 : i32
    %c0_i32_0 = arith.constant 0 : i32
    return %arg0, %c0_i32 : i32, i32
  }
  func.func @transform_1(%arg0: i32) -> (i32, i32) {
    %c0_i32 = arith.constant 0 : i32
    %c0_i32_0 = arith.constant 0 : i32
    %c0_i32_1 = arith.constant 0 : i32
    return %c0_i32, %c0_i32_0 : i32, i32
  }
  func.func @transform_2(%arg0: i32) -> (i32, i32) {
    %c0_i32 = arith.constant 0 : i32
    %c0_i32_0 = arith.constant 0 : i32
    %c0_i32_1 = arith.constant 0 : i32
    return %c0_i32, %c0_i32_0 : i32, i32
  }
  func.func @transform_3(%arg0: i32) -> (i32, i32) {
    %c0_i32 = arith.constant 0 : i32
    %c0_i32_0 = arith.constant 0 : i32
    %c0_i32_1 = arith.constant 0 : i32
    return %c0_i32, %c0_i32_0 : i32, i32
  }
  func.func @transform_4(%arg0: i32) -> (i32, i32) {
    %c0_i32 = arith.constant 0 : i32
    %c0_i32_0 = arith.constant 0 : i32
    %c0_i32_1 = arith.constant 0 : i32
    return %c0_i32, %c0_i32_0 : i32, i32
  }
  func.func @transform_5(%arg0: i32) -> (i32, i32) {
    %c0_i32 = arith.constant 0 : i32
    %c0_i32_0 = arith.constant 0 : i32
    %c0_i32_1 = arith.constant 0 : i32
    return %c0_i32, %c0_i32_0 : i32, i32
  }
  func.func @transform_6(%arg0: i32) -> (i32, i32) {
    %c0_i32 = arith.constant 0 : i32
    %c0_i32_0 = arith.constant 0 : i32
    %c0_i32_1 = arith.constant 0 : i32
    return %c0_i32, %c0_i32_0 : i32, i32
  }
  func.func @transform_7(%arg0: i32) -> (i32, i32) {
    %c0_i32 = arith.constant 0 : i32
    %c0_i32_0 = arith.constant 0 : i32
    %c0_i32_1 = arith.constant 0 : i32
    return %c0_i32, %c0_i32_0 : i32, i32
  }
  func.func @transform_8(%arg0: i32) -> (i32, i32) {
    %c0_i32 = arith.constant 0 : i32
    %c0_i32_0 = arith.constant 0 : i32
    %c0_i32_1 = arith.constant 0 : i32
    return %c0_i32, %c0_i32_0 : i32, i32
  }
  func.func @transform_9(%arg0: i32) -> (i32, i32) {
    %c0_i32 = arith.constant 0 : i32
    %c0_i32_0 = arith.constant 0 : i32
    return %arg0, %c0_i32 : i32, i32
  }
}

module attributes {stable_mosaic.version = 11 : i64} {
  func.func @_fused_linear_kernel(%arg0: i32, %arg1: memref<2x32xbf16, #tpu.memory_space<vmem>>, %arg2: memref<1x32xbf16, #tpu.memory_space<vmem>>, %arg3: memref<1x32xbf16, #tpu.memory_space<vmem>>, %arg4: memref<32x128xbf16, #tpu.memory_space<vmem>>, %arg5: memref<1x128xbf16, #tpu.memory_space<vmem>>, %arg6: memref<2x128xbf16, #tpu.memory_space<vmem>>) attributes {dimension_semantics = [#tpu.dimension_semantics<parallel>], iteration_bounds = array<i64: 1>, scalar_prefetch = 0 : i64, scratch_operands = 0 : i64, tpu.core_type = #tpu.core_type<tc>, window_params = [{transform_indices = @transform_0, window_bounds = array<i64: 2, 32>}, {pipeline_mode = #tpu.pipeline_mode<synchronous>, transform_indices = @transform_1, window_bounds = array<i64: 1, 32>}, {pipeline_mode = #tpu.pipeline_mode<synchronous>, transform_indices = @transform_2, window_bounds = array<i64: 1, 32>}, {pipeline_mode = #tpu.pipeline_mode<synchronous>, transform_indices = @transform_3, window_bounds = array<i64: 32, 128>}, {pipeline_mode = #tpu.pipeline_mode<synchronous>, transform_indices = @transform_4, window_bounds = array<i64: 1, 128>}, {transform_indices = @transform_5, window_bounds = array<i64: 2, 128>}]} {
    %c0 = arith.constant 0 : index
    %c0_0 = arith.constant 0 : index
    %0 = vector.load %arg1[%c0, %c0_0] : memref<2x32xbf16, #tpu.memory_space<vmem>>, vector<2x32xbf16>
    %1 = arith.extf %0 : vector<2x32xbf16> to vector<2x32xf32>
    %cst = arith.constant dense<0.000000e+00> : vector<2xf32>
    %2 = vector.multi_reduction <add>, %1, %cst [1] : vector<2x32xf32> to vector<2xf32>
    %3 = vector.shape_cast %2 : vector<2xf32> to vector<2x1xf32>
    %cst_1 = arith.constant 3.200000e+01 : f32
    %4 = vector.broadcast %cst_1 : f32 to vector<2x1xf32>
    %5 = arith.divf %3, %4 : vector<2x1xf32>
    %6 = vector.broadcast %5 : vector<2x1xf32> to vector<2x32xf32>
    %7 = arith.subf %1, %6 : vector<2x32xf32>
    %8 = vector.broadcast %5 : vector<2x1xf32> to vector<2x32xf32>
    %9 = arith.subf %1, %8 : vector<2x32xf32>
    %10 = arith.mulf %7, %9 : vector<2x32xf32>
    %cst_2 = arith.constant dense<0.000000e+00> : vector<2xf32>
    %11 = vector.multi_reduction <add>, %10, %cst_2 [1] : vector<2x32xf32> to vector<2xf32>
    %12 = vector.shape_cast %11 : vector<2xf32> to vector<2x1xf32>
    %cst_3 = arith.constant 3.200000e+01 : f32
    %13 = vector.broadcast %cst_3 : f32 to vector<2x1xf32>
    %14 = arith.divf %12, %13 : vector<2x1xf32>
    %15 = vector.broadcast %5 : vector<2x1xf32> to vector<2x32xf32>
    %16 = arith.subf %1, %15 : vector<2x32xf32>
    %cst_4 = arith.constant 9.99999974E-6 : f32
    %17 = vector.broadcast %cst_4 : f32 to vector<2x1xf32>
    %18 = arith.addf %14, %17 : vector<2x1xf32>
    %19 = math.rsqrt %18 : vector<2x1xf32>
    %20 = vector.broadcast %19 : vector<2x1xf32> to vector<2x32xf32>
    %21 = arith.mulf %16, %20 : vector<2x32xf32>
    %c0_5 = arith.constant 0 : index
    %c0_6 = arith.constant 0 : index
    %22 = vector.load %arg2[%c0_5, %c0_6] : memref<1x32xbf16, #tpu.memory_space<vmem>>, vector<1x32xbf16>
    %23 = arith.extf %22 : vector<1x32xbf16> to vector<1x32xf32>
    %24 = vector.broadcast %23 : vector<1x32xf32> to vector<2x32xf32>
    %25 = arith.mulf %21, %24 : vector<2x32xf32>
    %c0_7 = arith.constant 0 : index
    %c0_8 = arith.constant 0 : index
    %26 = vector.load %arg3[%c0_7, %c0_8] : memref<1x32xbf16, #tpu.memory_space<vmem>>, vector<1x32xbf16>
    %27 = arith.extf %26 : vector<1x32xbf16> to vector<1x32xf32>
    %28 = vector.broadcast %27 : vector<1x32xf32> to vector<2x32xf32>
    %29 = arith.addf %25, %28 : vector<2x32xf32>
    %30 = arith.truncf %29 : vector<2x32xf32> to vector<2x32xbf16>
    %c0_9 = arith.constant 0 : index
    %c0_10 = arith.constant 0 : index
    %31 = vector.load %arg4[%c0_9, %c0_10] : memref<32x128xbf16, #tpu.memory_space<vmem>>, vector<32x128xbf16>
    %cst_11 = arith.constant dense<0.000000e+00> : vector<2x128xf32>
    %32 = tpu.matmul %30, %31, %cst_11 {dimension_numbers = #tpu.dot_dimension_numbers<[1], [0], [0], [1], [0, 0, 1, 1], [], []>} : vector<2x32xbf16>, vector<32x128xbf16>, vector<2x128xf32> -> vector<2x128xf32>
    %c0_12 = arith.constant 0 : index
    %c0_13 = arith.constant 0 : index
    %33 = vector.load %arg5[%c0_12, %c0_13] : memref<1x128xbf16, #tpu.memory_space<vmem>>, vector<1x128xbf16>
    %34 = arith.extf %33 : vector<1x128xbf16> to vector<1x128xf32>
    %35 = vector.broadcast %34 : vector<1x128xf32> to vector<2x128xf32>
    %36 = arith.addf %32, %35 : vector<2x128xf32>
    %37 = arith.truncf %36 : vector<2x128xf32> to vector<2x128xbf16>
    %c0_14 = arith.constant 0 : index
    %c0_15 = arith.constant 0 : index
    %38 = vector.load %arg6[%c0_14, %c0_15] : memref<2x128xbf16, #tpu.memory_space<vmem>>, vector<2x128xbf16>
    tpu.vector_store %arg6[%c0_14, %c0_15], %37 {strides = array<i32>} : memref<2x128xbf16, #tpu.memory_space<vmem>>, vector<2x128xbf16>,
    return
  }
  func.func @transform_0(%arg0: i32) -> (i32, i32) {
    %c0_i32 = arith.constant 0 : i32
    %c0_i32_0 = arith.constant 0 : i32
    return %arg0, %c0_i32 : i32, i32
  }
  func.func @transform_1(%arg0: i32) -> (i32, i32) {
    %c0_i32 = arith.constant 0 : i32
    %c0_i32_0 = arith.constant 0 : i32
    %c0_i32_1 = arith.constant 0 : i32
    return %c0_i32, %c0_i32_0 : i32, i32
  }
  func.func @transform_2(%arg0: i32) -> (i32, i32) {
    %c0_i32 = arith.constant 0 : i32
    %c0_i32_0 = arith.constant 0 : i32
    %c0_i32_1 = arith.constant 0 : i32
    return %c0_i32, %c0_i32_0 : i32, i32
  }
  func.func @transform_3(%arg0: i32) -> (i32, i32) {
    %c0_i32 = arith.constant 0 : i32
    %c0_i32_0 = arith.constant 0 : i32
    %c0_i32_1 = arith.constant 0 : i32
    return %c0_i32, %c0_i32_0 : i32, i32
  }
  func.func @transform_4(%arg0: i32) -> (i32, i32) {
    %c0_i32 = arith.constant 0 : i32
    %c0_i32_0 = arith.constant 0 : i32
    %c0_i32_1 = arith.constant 0 : i32
    return %c0_i32, %c0_i32_0 : i32, i32
  }
  func.func @transform_5(%arg0: i32) -> (i32, i32) {
    %c0_i32 = arith.constant 0 : i32
    %c0_i32_0 = arith.constant 0 : i32
    return %arg0, %c0_i32 : i32, i32
  }
}

</mosaic_0001>

<bundles_post_ra>
// kernel: point_vit_forward.10
= control target key start
LH: loop header
LB: loop body
LE: loop exit
PB: predicated region body
PF: predicated region fallthrough
CT: control target
= control target key end

     0   :  { %vm33_vm0 = vcmask 1040384   ;;  %vm34_vm1 = vcmask 1041408   ;;  %v114_v0 = vmov 0.0   ;;  %v115_v2 = vmov 65535   ;;  %s152_s1 = inlined_call_operand.vmem [shape: bf16[3,32], index: 1, kind: input, shape index: {}]   ;;  %s153_s0 = inlined_call_operand.vmem [shape: bf16[16,3], index: 0, kind: input, shape index: {}]   ;;  %s154_s2 = inlined_call_operand.vmem [shape: bf16[1,32], index: 2, kind: input, shape index: {}]   ;;  %s155_s3 = inlined_call_operand.vmem [shape: bf16[16,32], index: 3, kind: output, shape index: {}]  }
   0x1   :  { %104 = vmatprep.subr.bf16.mxu0 %v114_v0  ;;  %v17_v1 = vld [vmem:[%s152_s1] sm:$0x3]  ;;  %v35_v3 = vsel %vm33_vm0, 4294967295, %v115_v2  ;;  %vm116_vm2 = vmmov 0   ;;  %vm29_vm3 = vcmask 23552   ;;  %v20_v7 = vlaneseq }
   0x2   :  { %v36_v4 = vsel %vm34_vm1, %v35_v3, 0  ;;  %106 = vmatprep.mubr.msk.bf16.mxu0 %vm116_vm2, %v114_v0  ;;  %v113_v6 = vld [vmem:[%s153_s0] sm:$0xff]   ;;  %vm89_vm4 = vcmask 257024  }
   0x3   :  { %v38_v5 = vand.u32 %v36_v4, %v17_v1  ;;  %v21_v8 = vshrl.u32 %v20_v7, 7  ;;  %v18_v9 = vld [vmem:[%s154_s2] sm:$0x1] }
   0x4   :  { %v19_v10 = vunpack.c.l.bf16 %v18_v9 }
   0x5   :  { %105 = vmatpush3.bf16.msra.mxu0 %v38_v5  ;;  %v22_v11 = vsub.s32 0, %v21_v8 }
   0x7   :  { %v23_v12 = vrot.slane %v19_v10, %v22_v11 }
   0x8   :  { %107 = vmatmul.mubr.msk.bf16.vlgmr.msra.gmra.mrb[0].mxu0 %vm29_vm3, %v113_v6 }
  0xdb   :  { %v74_v13 = vpop.f32.mrb[0].mxu0 }
  0xdc   :  { %v75_v14 = vadd.f32 %v74_v13, %v23_v12  ;;  %v108_v15 = vpop.f32.mrb[1].mxu0 }
  0xdd   :  { %v77_v16 = vpop.f32.mrb[2].mxu0 }
  0xde   :  { %v100_v17 = vpack.c.bf16 %v75_v14, %v75_v14  ;;  %v78_v18 = vadd.f32 %v77_v16, %v23_v12  ;;  %v109_v19 = vpop.f32.mrb[3].mxu0 }
  0xe0   :  { %90 = vst.msk [vmem:[%s155_s3] sm:$0xf] %vm89_vm4, %v100_v17  ;;  %v101_v20 = vpack.c.bf16 %v78_v18, %v78_v18 }
  0xe2   :  { %91 = vst.msk [vmem:[%s155_s3 + $0x4] sm:$0xf] %vm89_vm4, %v101_v20 }

// kernel: point_vit_forward.13
= control target key start
LH: loop header
LB: loop body
LE: loop exit
PB: predicated region body
PF: predicated region fallthrough
CT: control target
= control target key end

     0   :  { %vm51_vm0 = vcmask 261120   ;;  %v27_v4 = vlaneseq  ;;  %vm131_vm1 = vcmask 253952   ;;  %vm128_vm2 = vcmask 257024   ;;  %s224_s1 = inlined_call_operand.vmem [shape: bf16[32,32], index: 1, kind: input, shape index: {}]   ;;  %s225_s0 = inlined_call_operand.vmem [shape: bf16[18,32], index: 0, kind: input, shape index: {}]   ;;  %s226_s2 = inlined_call_operand.vmem [shape: bf16[1,32], index: 2, kind: input, shape index: {}]   ;;  %s227_s3 = inlined_call_operand.vmem [shape: bf16[18,32], index: 3, kind: input, shape index: {}]   ;;  %s228_s4 = inlined_call_operand.vmem [shape: bf16[18,32], index: 4, kind: output, shape index: {}]  }
   0x1   :  { %v165_v0 = vld [vmem:[%s224_s1] sm:$0xff]   ;;  %v166_v1 = vld [vmem:[%s224_s1 + $0x8] sm:$0xff]  }
   0x2   :  { %157 = vmatprep.subr.bf16.mxu0 %v165_v0  ;;  %v167_v2 = vld [vmem:[%s225_s0] sm:$0xff]   ;;  %v168_v3 = vld [vmem:[%s225_s0 + $0x8] ss:$0 sps:$4 sm:$0x11]   ;;  %v28_v5 = vshrl.u32 %v27_v4, 7 }
   0x3   :  { %158 = vmatpush3.bf16.msra.mxu0 %v165_v0  ;;  %161 = vmatprep.mubr.msk.bf16.mxu0 %vm51_vm0, %v167_v2  ;;  %v25_v6 = vld [vmem:[%s226_s2] sm:$0x1]  ;;  %v108_v9 = vld [vmem:[%s227_s3 + $0x8] sm:$0x1] }
   0x4   :  { %159 = vmatprep.subr.bf16.mxu0 %v166_v1  ;;  %v26_v7 = vunpack.c.l.bf16 %v25_v6  ;;  %v29_v8 = vsub.s32 0, %v28_v5  ;;  %v150_v11 = vld [vmem:[%s227_s3] sm:$0xff]   ;;  %v111_v12 = vunpack.c.l.bf16 %v108_v9 }
   0x5   :  { %v151_v14 = vunpack.c.l.bf16 %v150_v11  ;;  %v152_v19 = vunpack.c.h.bf16 %v150_v11 }
   0x6   :  { %v30_v10 = vrot.slane %v26_v7, %v29_v8 }
   0x7   :  { %160 = vmatpush3.bf16.msra.mxu0 %v166_v1 }
   0xa   :  { %162 = vmatmul.mubr.msk.bf16.vlgmr.msra.gmra.mrb[0].mxu0 %vm51_vm0, %v168_v3 }
  0xdd   :  { %v163_v13 = vpop.f32.mrb[0].mxu0 }
  0xde   :  { %v101_v15 = vadd.f32 %v163_v13, %v30_v10  ;;  %v92_v16 = vpop.f32.mrb[1].mxu0 }
  0xdf   :  { %v93_v17 = vadd.f32 %v92_v16, %v30_v10  ;;  %v164_v18 = vpop.f32.mrb[2].mxu0 }
  0xe0   :  { %v114_v20 = vadd.f32 %v111_v12, %v101_v15  ;;  %v95_v21 = vpop.f32.mrb[3].mxu0 }
  0xe1   :  { %v112_v22 = vadd.f32 %v151_v14, %v93_v17  ;;  %v96_v23 = vadd.f32 %v95_v21, %v30_v10 }
  0xe2   :  { %v148_v24 = vpack.c.bf16 %v114_v20, %v114_v20 }
  0xe3   :  { %v146_v25 = vpack.c.bf16 %v112_v22, %v112_v22  ;;  %v113_v26 = vadd.f32 %v152_v19, %v96_v23 }
  0xe4   :  { %132 = vst.msk [vmem:[%s228_s4 + $0x8] sm:$0x1] %vm131_vm1, %v148_v24 }
  0xe5   :  { %129 = vst.msk [vmem:[%s228_s4] sm:$0xf] %vm128_vm2, %v146_v25  ;;  %v147_v27 = vpack.c.bf16 %v113_v26, %v113_v26 }
  0xe7   :  { %130 = vst.msk [vmem:[%s228_s4 + $0x4] sm:$0xf] %vm128_vm2, %v147_v27 }

// kernel: point_vit_forward.11
= control target key start
LH: loop header
LB: loop body
LE: loop exit
PB: predicated region body
PF: predicated region fallthrough
CT: control target
= control target key end

     0   :  { %vm30_vm0 = vcmask 261120   ;;  %vm37_vm1 = vcmask 254976   ;;  %v74_v32 = vlaneseq  ;;  %vm184_vm2 = vcmask 253952   ;;  %s258_s11 = smov 96   ;;  %s259_s17 = smov 64   ;;  %s365_s0 = inlined_call_operand.vmem [shape: bf16[18,32], index: 0, kind: input, shape index: {}]   ;;  %s366_s3 = inlined_call_operand.vmem [shape: bf16[32,96], index: 3, kind: input, shape index: {}]   ;;  %s367_s1 = inlined_call_operand.vmem [shape: bf16[1,32], index: 1, kind: input, shape index: {}]   ;;  %s368_s2 = inlined_call_operand.vmem [shape: bf16[1,32], index: 2, kind: input, shape index: {}]   ;;  %s369_s4 = inlined_call_operand.vmem [shape: bf16[1,96], index: 4, kind: input, shape index: {}]   ;;  %s370_s5 = inlined_call_operand.vmem [shape: bf16[18,32], index: 5, kind: output, shape index: {0}]   ;;  %s371_s6 = inlined_call_operand.vmem [shape: bf16[18,32], index: 6, kind: output, shape index: {1}]   ;;  %s372_s7 = inlined_call_operand.vmem [shape: bf16[18,32], index: 7, kind: output, shape index: {2}]  }
   0x1   :  { %v233_v0 = vld [vmem:[%s365_s0] sm:$0xff]   ;;  %v26_v1 = vld [vmem:[%s365_s0 + $0x8] sm:$0x1]  ;;  %vm181_vm3 = vcmask 257024  }
   0x2   :  { %v234_v2 = vunpack.c.l.bf16 %v233_v0  ;;  %v29_v3 = vunpack.c.l.bf16 %v26_v1  ;;  %v235_v4 = vunpack.c.h.bf16 %v233_v0  ;;  %v250_v23 = vld [vmem:[%s366_s3] sm:$0xff]   ;;  %v251_v24 = vld [vmem:[%s366_s3 + $0x8] sm:$0xff]   ;;  %v75_v35 = vshrl.u32 %v74_v32, 7 }
   0x3   :  { %240 = vmatprep.subr.bf16.mxu0 %v250_v23  ;;  %v72_v36 = vld [vmem:[%s367_s1] sm:$0x1] }
   0x4   :  { %v31_v5 = vsel %vm30_vm0, %v234_v2, 0.0  ;;  %v38_v6 = vsel %vm37_vm1, %v29_v3, 0.0  ;;  %v34_v7 = vsel %vm30_vm0, %v235_v4, 0.0  ;;  %241 = vmatpush3.bf16.msra.mxu0 %v250_v23  ;;  %v73_v37 = vunpack.c.l.bf16 %v72_v36  ;;  %v81_v39 = vld [vmem:[%s368_s2] sm:$0x1] }
   0x5   :  { %32 = vadd.xlane.f32.xlu0 %v31_v5  ;;  %39 = vadd.xlane.f32.xlu1 %v38_v6  ;;  %v76_v38 = vsub.s32 0, %v75_v35  ;;  %v82_v43 = vunpack.c.l.bf16 %v81_v39  ;;  %v96_v57 = vld [vmem:[%s369_s4] sm:$0x1] }
   0x6   :  { %242 = vmatprep.subr.bf16.mxu0 %v251_v24  ;;  %v97_v58 = vunpack.c.l.bf16 %v96_v57 }
   0x7   :  { %v77_v42 = vrot.slane %v73_v37, %v76_v38  ;;  %v86_v49 = vrot.slane %v82_v43, %v76_v38 }
   0x8   :  { %243 = vmatpush3.bf16.msra.mxu0 %v251_v24  ;;  %v101_v59 = vrot.slane %v97_v58, %v76_v38 }
   0x9   :  { %35 = vadd.xlane.f32.xlu0 %v34_v7 }
  0x92   :  { %v33_v8 = vpop.xlane.xlu0 %32  ;;  %v40_v9 = vpop.xlane.xlu1 %39 }
  0x93   :  { %v42_v10 = vmul.f32 0.03125, %v33_v8  ;;  %v44_v11 = vmul.f32 0.03125, %v40_v9 }
  0x95   :  { %v45_v12 = vsub.f32 %v234_v2, %v42_v10  ;;  %v47_v13 = vsub.f32 %v29_v3, %v44_v11 }
  0x96   :  { %v36_v14 = vpop.xlane.xlu0 %35 }
  0x97   :  { %v43_v15 = vmul.f32 0.03125, %v36_v14  ;;  %v48_v16 = vmul.f32 %v45_v12, %v45_v12  ;;  %v50_v17 = vmul.f32 %v47_v13, %v47_v13 }
  0x99   :  { %v46_v18 = vsub.f32 %v235_v4, %v43_v15  ;;  %v51_v19 = vsel %vm30_vm0, %v48_v16, 0.0  ;;  %v57_v20 = vsel %vm37_vm1, %v50_v17, 0.0 }
  0x9a   :  { %52 = vadd.xlane.f32.xlu1 %v51_v19 }
  0x9b   :  { %v49_v21 = vmul.f32 %v46_v18, %v46_v18 }
  0x9d   :  { %v54_v22 = vsel %vm30_vm0, %v49_v21, 0.0 }
  0x9e   :  { %58 = vadd.xlane.f32.xlu1 %v57_v20  ;;  %55 = vadd.xlane.f32.xlu0 %v54_v22 }
 0x127   :  { %v53_v25 = vpop.xlane.xlu1 %52 }
 0x128   :  { %v60_v26 = vmul.f32 0.03125, %v53_v25 }
 0x12a   :  { %v63_v27 = vadd.f32 1e-05, %v60_v26 }
 0x12b   :  { %v59_v28 = vpop.xlane.xlu1 %58  ;;  %v56_v29 = vpop.xlane.xlu0 %55 }
 0x12c   :  { %252 = vrsqrt.f32 %v63_v27  ;;  %v62_v30 = vmul.f32 0.03125, %v59_v28  ;;  %v61_v31 = vmul.f32 0.03125, %v56_v29 }
 0x12e   :  { %v65_v33 = vadd.f32 1e-05, %v62_v30  ;;  %v64_v34 = vadd.f32 1e-05, %v61_v31 }
 0x130   :  { %254 = vrsqrt.f32 %v65_v33 }
 0x131   :  { %256 = vrsqrt.f32 %v64_v34 }
 0x136   :  { %v253_v40 = vpop.eup %252 }
 0x137   :  { %v69_v41 = vmul.f32 %v253_v40, %v45_v12 }
 0x139   :  { %v78_v48 = vmul.f32 %v77_v42, %v69_v41 }
 0x13a   :  { %v255_v44 = vpop.eup %254 }
 0x13b   :  { %v257_v45 = vpop.eup %256  ;;  %v71_v46 = vmul.f32 %v255_v44, %v47_v13  ;;  %v87_v53 = vadd.f32 %v86_v49, %v78_v48 }
 0x13c   :  { %v70_v47 = vmul.f32 %v257_v45, %v46_v18 }
 0x13d   :  { %v80_v50 = vmul.f32 %v77_v42, %v71_v46 }
 0x13e   :  { %v79_v51 = vmul.f32 %v77_v42, %v70_v47 }
 0x13f   :  { %v89_v52 = vadd.f32 %v86_v49, %v80_v50 }
 0x140   :  { %v88_v54 = vadd.f32 %v86_v49, %v79_v51 }
 0x141   :  { %v91_v55 = vpack.c.bf16 %v89_v52, %v89_v52 }
 0x142   :  { %v90_v56 = vpack.c.bf16 %v88_v54, %v87_v53 }
 0x144   :  { %244 = vmatprep.mubr.msk.bf16.mxu0 %vm30_vm0, %v90_v56 }
 0x145   :  { %245 = vmatmul.mubr.msk.bf16.vlgmr.msra.gmra.mrb[0].mxu0 %vm30_vm0, %v91_v55 }
 0x218   :  { %v246_v60 = vpop.f32.mrb[0].mxu0 }
 0x219   :  { %v163_v61 = vadd.f32 %v246_v60, %v101_v59  ;;  %v154_v62 = vpop.f32.mrb[1].mxu0 }
 0x21a   :  { %v155_v63 = vadd.f32 %v154_v62, %v101_v59  ;;  %v247_v0 = vpop.f32.mrb[2].mxu0 }
 0x21b   :  { %v231_v1 = vpack.c.bf16 %v163_v61, %v163_v61  ;;  %v157_v2 = vpop.f32.mrb[3].mxu0 }
 0x21c   :  { %v229_v3 = vpack.c.bf16 %v155_v63, %v155_v63  ;;  %v158_v4 = vadd.f32 %v157_v2, %v101_v59 }
 0x21d   :  { %190 = vrot.lane.b32.xlu1 %v231_v1, %s258_s11  ;;  %185 = vst.msk [vmem:[%s370_s5 + $0x8] sm:$0x1] %vm184_vm2, %v231_v1 }
 0x21e   :  { %182 = vst.msk [vmem:[%s370_s5] sm:$0xf] %vm181_vm3, %v229_v3  ;;  %v230_v5 = vpack.c.bf16 %v158_v4, %v158_v4  ;;  %186 = vrot.lane.b32.xlu0 %v229_v3, %s258_s11 }
 0x220   :  { %183 = vst.msk [vmem:[%s370_s5 + $0x4] sm:$0xf] %vm181_vm3, %v230_v5 }
 0x221   :  { %198 = vrot.lane.b32.xlu1 %v229_v3, %s259_s17 }
 0x222   :  { %200 = vrot.lane.b32.xlu0 %v230_v5, %s259_s17 }
 0x225   :  { %188 = vrot.lane.b32.xlu1 %v230_v5, %s258_s11 }
 0x229   :  { %202 = vrot.lane.b32.xlu1 %v231_v1, %s259_s17 }
 0x28f   :  { %v191_v6 = vpop.permute.xlu1 %190 }
 0x290   :  { %197 = vst.msk [vmem:[%s371_s6 + $0x8] sm:$0x1] %vm184_vm2, %v191_v6  ;;  %v187_v7 = vpop.permute.xlu0 %186 }
 0x291   :  { %195 = vst.msk [vmem:[%s371_s6] sm:$0xf] %vm181_vm3, %v187_v7 }
 0x293   :  { %v199_v8 = vpop.permute.xlu1 %198 }
 0x294   :  { %207 = vst.msk [vmem:[%s372_s7] sm:$0xf] %vm181_vm3, %v199_v8  ;;  %v201_v9 = vpop.permute.xlu0 %200 }
 0x295   :  { %208 = vst.msk [vmem:[%s372_s7 + $0x4] sm:$0xf] %vm181_vm3, %v201_v9 }
 0x297   :  { %v189_v10 = vpop.permute.xlu1 %188 }
 0x298   :  { %196 = vst.msk [vmem:[%s371_s6 + $0x4] sm:$0xf] %vm181_vm3, %v189_v10 }
 0x29b   :  { %v203_v11 = vpop.permute.xlu1 %202 }
 0x29c   :  { %209 = vst.msk [vmem:[%s372_s7 + $0x8] sm:$0x1] %vm184_vm2, %v203_v11 }

// kernel: point_vit_forward.12
= control target key start
LH: loop header
LB: loop body
LE: loop exit
PB: predicated region body
PF: predicated region fallthrough
CT: control target
= control target key end

     0   :  { %s1063_s12 = smov 0   ;;  %s1173_s0 = inlined_call_operand.vmem [shape: bf16[2,9,32], index: 0, kind: input, shape index: {}]   ;;  %s1174_s1 = inlined_call_operand.vmem [shape: bf16[2,9,32], index: 1, kind: input, shape index: {}]   ;;  %s1175_s2 = inlined_call_operand.vmem [shape: bf16[2,9,32], index: 2, kind: input, shape index: {}]   ;;  %s1176_s3 = inlined_call_operand.vmem [shape: bf16[2,9,32], index: 3, kind: output, shape index: {}]  }
   0x1 LB: > { %s861_s13 = sadd.s32 4294967295, %s1032_s12   ;;  %p865_p0 = scmp.ge.s32.totalorder %s1032_s12, 1  ;;  %s1032_s12 = sphi %s1063_s12, %s13_s12  }
   0x2   : > { %p157_p1 = scmp.lt.s32.totalorder %s1032_s12, 3 }
   0x4   : > { %p158_p2 = pnand %p865_p0, %p157_p1 }
   0x5   : > { %p191_p3 = scmp.lt.s32.totalorder (!%p158_p2), %s861_s13, 1  ;;  %v1034_v0 = vmov (!%p158_p2), 0.0   ;;  %vm1035_vm0 = vmmov (!%p158_p2), 0   ;;  %vm228_vm1 = vcmask (!%p158_p2), 64512   ;;  %vm278_vm2 = vcmask (!%p158_p2), 72704   ;;  %s1036_s21 = smov (!%p158_p2), 120  }
   0x6   : > { %161 = sbr.rel (%p158_p2) target bundleno = 1500 (0x5dc), region = 32  ;;  %911 = vmatprep.subr.bf16.mxu0 (!%p158_p2), %v1034_v0  ;;  %913 = vmatprep.mubr.msk.bf16.mxu0 (!%p158_p2), %vm1035_vm0, %v1034_v0  ;;  %vm282_vm3 = vcmask (!%p158_p2), 65536   ;;  %s1037_s22 = smov (!%p158_p2), 104   ;;  %vm311_vm4 = vcmask (!%p158_p2), 1043456   ;;  %vm312_vm5 = vcmask (!%p158_p2), 1044480   ;;  %v1038_v23 = vmov (!%p158_p2), 65535  }
   0x7   : > { %917 = vmatprep.subr.bf16.mxu1 (!%p158_p2), %v1034_v0  ;;  %919 = vmatprep.mubr.msk.bf16.mxu1 (!%p158_p2), %vm1035_vm0, %v1034_v0  ;;  %v313_v24 = vsel (!%p158_p2), %vm311_vm4, 4294967295, %v1038_v23  ;;  %s1039_s26 = smov (!%p158_p2), 112   ;;  %s1040_s27 = smov (!%p158_p2), 8   ;;  %vm760_vm6 = vcmask (!%p158_p2), 130048   ;;  %vm763_vm7 = vcmask (!%p158_p2), 195584   ;;  %vm776_vm8 = vcmask (!%p158_p2), 253952  }
   0x8   : > { %v1105_v25 = vsel (!%p158_p2), %vm312_vm5, %v313_v24, 0  ;;  %s1041_s28 = smov (!%p158_p2), 16   ;;  %s1042_s29 = smov (!%p158_p2), 24   ;;  %vm777_vm9 = vsmask.f32 (!%p158_p2), 256  ;;  %vm774_vm10 = vcmask (!%p158_p2), 257024  }
   0x9   : > { %vm778_vm11 = vmand (!%p158_p2), %vm776_vm8, %vm777_vm9 }
   0xd   : > { %s1178_s13 = smov (!%p191_p3, %s861_s13), 1 }
   0xe   : > { %s1077_s14 = sshll.u32 %s1178_s13, 3 }
   0xf   : > { %s200_s17 = scalar_lea.vmem %s1174_s1, %s1077_s14  ;;  %s195_s20 = scalar_lea.vmem %s1173_s0, %s1077_s14 }
  0x10   : > { %v991_v1 = vld [vmem:[%s200_s17] sm:$0x1f]   ;;  %s205_s25 = scalar_lea.vmem %s1175_s2, %s1077_s14  ;;  %s210_s5 = scalar_lea.vmem %s1176_s3, %s1077_s14 }
  0x11   : > { %v233_v2 = vsel %vm228_vm1, %v991_v1, 0  ;;  %v992_v3 = vld [vmem:[%s195_s20] sm:$0x1f]  }
  0x12   : > { %912 = vmatpush3.bf16.xpose.msra.mxu0 %v233_v2  ;;  %v1102_v22 = vld [vmem:[%s205_s25] sm:$0x1f]  }
  0x13   : > { %929 = vmatprep.subr.bf16.mxu0 %v1034_v0  ;;  %v316_v26 = vand.u32 %v1102_v22, %v1105_v25 }
  0x15   : > { %918 = vmatpush3.bf16.msra.mxu1 %v316_v26 }
  0x16   : > { %923 = vmatprep.subr.bf16.mxu1 %v1034_v0 }
  0x19   : > { %914 = vmatmul.mubr.msk.bf16.vlgmr.msra.gmra.mrb[0].mxu0 %vm228_vm1, %v992_v3 }
  0x1a   : > { %931 = vmatprep.mubr.msk.bf16.mxu0 %vm1035_vm0, %v1034_v0 }
  0xec   : > { %v269_v4 = vpop.f32.mrb[0].mxu0 }
  0xed   : > { %v276_v5 = vmul.f32 0.35355338, %v269_v4  ;;  %v915_v6 = vpop.f32.mrb[1].mxu0 }
  0xee   : > { %v272_v7 = vpop.f32.mrb[2].mxu0 }
  0xef   : > { %v277_v8 = vmul.f32 0.35355338, %v272_v7  ;;  %v916_v9 = vpop.f32.mrb[3].mxu0  ;;  %v279_v10 = vsel %vm278_vm2, %v276_v5, -inf }
  0xf0   : > { %280 = vmax.xlane.f32.xlu0 %v279_v10 }
  0xf1   : > { %v283_v11 = vsel %vm282_vm3, %v277_v8, -inf }
  0xf4   : > { %284 = vmax.xlane.f32.xlu0 %v283_v11 }
 0x10a   : > { %361 = vrot.lane.b32.xlu0 %v991_v1, %s1036_s21 }
 0x10e   : > { %611 = vrot.lane.b32.xlu0 %v991_v1, %s1037_s22 }
 0x17d   : > { %v281_v12 = vpop.xlane.xlu0 %280 }
 0x17e   : > { %v286_v13 = vsub.f32 %v276_v5, %v281_v12 }
 0x180   : > { %v288_v14 = vmul.f32 1.442695, %v286_v13 }
 0x181   : > { %v285_v15 = vpop.xlane.xlu0 %284 }
 0x182   : > { %994 = vpow2.f32 %v288_v14  ;;  %v287_v16 = vsub.f32 %v277_v8, %v285_v15 }
 0x184   : > { %v290_v17 = vmul.f32 1.442695, %v287_v16 }
 0x185   : > { %v362_v31 = vpop.permute.xlu0 %361 }
 0x186   : > { %996 = vpow2.f32 %v290_v17  ;;  %v367_v35 = vsel %vm228_vm1, %v362_v31, 0 }
 0x189   : > { %v612_v39 = vpop.permute.xlu0 %611 }
 0x18a   : > { %v617_v41 = vsel %vm228_vm1, %v612_v39, 0 }
 0x18c   : > { %v995_v18 = vpop.eup %994 }
 0x18d   : > { %v292_v19 = vsel %vm278_vm2, %v995_v18, 0.0 }
 0x18e   : > { %293 = vadd.xlane.f32.xlu1 %v292_v19 }
 0x190   : > { %v997_v20 = vpop.eup %996 }
 0x191   : > { %v295_v21 = vsel %vm282_vm3, %v997_v20, 0.0 }
 0x192   : > { %296 = vadd.xlane.f32.xlu1 %v295_v21 }
 0x1a3   : > { %359 = vrot.lane.b32.xlu1 %v992_v3, %s1036_s21 }
 0x1a7   : > { %486 = vrot.lane.b32.xlu1 %v991_v1, %s1039_s26 }
 0x1ab   : > { %484 = vrot.lane.b32.xlu1 %v992_v3, %s1039_s26 }
 0x1af   : > { %609 = vrot.lane.b32.xlu1 %v992_v3, %s1037_s22 }
 0x21b   : > { %v294_v27 = vpop.xlane.xlu1 %293 }
 0x21c   : > { %998 = vrcp.f32 %v294_v27 }
 0x21f   : > { %v297_v28 = vpop.xlane.xlu1 %296 }
 0x220   : > { %1000 = vrcp.f32 %v297_v28 }
 0x223   : > { %v360_v34 = vpop.permute.xlu1 %359 }
 0x226   : > { %v999_v29 = vpop.eup %998 }
 0x227   : > { %v300_v32 = vmul.f32 %v999_v29, %v995_v18  ;;  %v487_v37 = vpop.permute.xlu1 %486 }
 0x228   : > { %v492_v38 = vsel %vm228_vm1, %v487_v37, 0 }
 0x22a   : > { %v1001_v30 = vpop.eup %1000 }
 0x22b   : > { %v301_v33 = vmul.f32 %v1001_v30, %v997_v20  ;;  %v485_v40 = vpop.permute.xlu1 %484 }
 0x22d   : > { %v302_v36 = vpack.c.bf16 %v301_v33, %v300_v32 }
 0x22f   : > { %920 = vmatmul.mubr.msk.bf16.vlgmr.msra.gmra.mrb[0].mxu1 %vm278_vm2, %v302_v36  ;;  %v610_v42 = vpop.permute.xlu1 %609 }
 0x230   : > { %924 = vmatpush3.bf16.xpose.msra.mxu1 %v367_v35  ;;  %925 = vmatprep.mubr.msk.bf16.mxu1 %vm1035_vm0, %v1034_v0 }
 0x231   : > { %935 = vmatprep.subr.bf16.mxu1 %v1034_v0 }
 0x237   : > { %926 = vmatmul.mubr.msk.bf16.vlgmr.msra.gmra.mrb[4].mxu1 %vm228_vm1, %v360_v34 }
 0x238   : > { %936 = vmatpush3.bf16.xpose.msra.mxu1 %v492_v38  ;;  %937 = vmatprep.mubr.msk.bf16.mxu1 %vm1035_vm0, %v1034_v0 }
 0x239   : > { %947 = vmatprep.subr.bf16.mxu1 %v1034_v0 }
 0x23f   : > { %938 = vmatmul.mubr.msk.bf16.vlgmr.msra.gmra.mrb[8].mxu1 %vm228_vm1, %v485_v40 }
 0x240   : > { %948 = vmatpush3.bf16.xpose.msra.mxu1 %v617_v41  ;;  %949 = vmatprep.mubr.msk.bf16.mxu1 %vm1035_vm0, %v1034_v0 }
 0x247   : > { %950 = vmatmul.mubr.msk.bf16.vlgmr.msra.gmra.mrb[12].mxu1 %vm228_vm1, %v610_v42 }
 0x302   : > { %v1128_v43 = vpop.f32.mrb[0].mxu1 }
 0x303   : > { %v921_v44 = vpop.f32.mrb[1].mxu1 }
 0x304   : > { %v1130_v45 = vpop.f32.mrb[2].mxu1 }
 0x305   : > { %v922_v46 = vpop.f32.mrb[3].mxu1 }
 0x30a   : > { %v403_v47 = vpop.f32.mrb[4].mxu1 }
 0x30b   : > { %v410_v48 = vmul.f32 0.35355338, %v403_v47  ;;  %v927_v49 = vpop.f32.mrb[5].mxu1 }
 0x30c   : > { %v406_v50 = vpop.f32.mrb[6].mxu1 }
 0x30d   : > { %v411_v51 = vmul.f32 0.35355338, %v406_v50  ;;  %v928_v52 = vpop.f32.mrb[7].mxu1  ;;  %v412_v53 = vsel %vm278_vm2, %v410_v48, -inf }
 0x30e   : > { %413 = vmax.xlane.f32.xlu0 %v412_v53 }
 0x30f   : > { %v415_v54 = vsel %vm282_vm3, %v411_v51, -inf }
 0x310   : > { %416 = vmax.xlane.f32.xlu1 %v415_v54 }
 0x312   : > { %v528_v55 = vpop.f32.mrb[8].mxu1 }
 0x313   : > { %v535_v56 = vmul.f32 0.35355338, %v528_v55  ;;  %v939_v57 = vpop.f32.mrb[9].mxu1 }
 0x314   : > { %v531_v58 = vpop.f32.mrb[10].mxu1 }
 0x315   : > { %v536_v59 = vmul.f32 0.35355338, %v531_v58  ;;  %v940_v60 = vpop.f32.mrb[11].mxu1  ;;  %v537_v61 = vsel %vm278_vm2, %v535_v56, -inf }
 0x316   : > { %538 = vmax.xlane.f32.xlu0 %v537_v61 }
 0x317   : > { %v540_v62 = vsel %vm282_vm3, %v536_v59, -inf }
 0x31a   : > { %541 = vmax.xlane.f32.xlu0 %v540_v62  ;;  %v653_v63 = vpop.f32.mrb[12].mxu1 }
 0x31b   : > { %v660_v1 = vmul.f32 0.35355338, %v653_v63  ;;  %v951_v2 = vpop.f32.mrb[13].mxu1 }
 0x31c   : > { %v656_v3 = vpop.f32.mrb[14].mxu1 }
 0x31d   : > { %v661_v4 = vmul.f32 0.35355338, %v656_v3  ;;  %v662_v5 = vsel %vm278_vm2, %v660_v1, -inf  ;;  %v952_v6 = vpop.f32.mrb[15].mxu1 }
 0x31e   : > { %663 = vmax.xlane.f32.xlu0 %v662_v5 }
 0x31f   : > { %v665_v7 = vsel %vm282_vm3, %v661_v4, -inf }
 0x320   : > { %666 = vmax.xlane.f32.xlu1 %v665_v7 }
 0x39b   : > { %v414_v8 = vpop.xlane.xlu0 %413 }
 0x39c   : > { %v418_v9 = vsub.f32 %v410_v48, %v414_v8 }
 0x39d   : > { %v417_v10 = vpop.xlane.xlu1 %416 }
 0x39e   : > { %v420_v11 = vmul.f32 1.442695, %v418_v9  ;;  %v419_v12 = vsub.f32 %v411_v51, %v417_v10 }
 0x3a0   : > { %1002 = vpow2.f32 %v420_v11  ;;  %v422_v13 = vmul.f32 1.442695, %v419_v12 }
 0x3a2   : > { %1004 = vpow2.f32 %v422_v13 }
 0x3a3   : > { %v539_v14 = vpop.xlane.xlu0 %538 }
 0x3a4   : > { %v543_v15 = vsub.f32 %v535_v56, %v539_v14 }
 0x3a6   : > { %v545_v16 = vmul.f32 1.442695, %v543_v15 }
 0x3a7   : > { %v542_v17 = vpop.xlane.xlu0 %541 }
 0x3a8   : > { %1006 = vpow2.f32 %v545_v16  ;;  %v544_v18 = vsub.f32 %v536_v59, %v542_v17 }
 0x3aa   : > { %v1003_v19 = vpop.eup %1002  ;;  %v547_v20 = vmul.f32 1.442695, %v544_v18 }
 0x3ab   : > { %v664_v21 = vpop.xlane.xlu0 %663  ;;  %v424_v23 = vsel %vm278_vm2, %v1003_v19, 0.0 }
 0x3ac   : > { %v1005_v24 = vpop.eup %1004  ;;  %1008 = vpow2.f32 %v547_v20  ;;  %v668_v26 = vsub.f32 %v660_v1, %v664_v21  ;;  %425 = vadd.xlane.f32.xlu0 %v424_v23 }
 0x3ad   : > { %v427_v27 = vsel %vm282_vm3, %v1005_v24, 0.0  ;;  %v667_v35 = vpop.xlane.xlu1 %666 }
 0x3ae   : > { %v670_v28 = vmul.f32 1.442695, %v668_v26  ;;  %428 = vadd.xlane.f32.xlu1 %v427_v27  ;;  %v669_v36 = vsub.f32 %v661_v4, %v667_v35 }
 0x3b0   : > { %1010 = vpow2.f32 %v670_v28  ;;  %v672_v37 = vmul.f32 1.442695, %v669_v36 }
 0x3b2   : > { %v1007_v29 = vpop.eup %1006  ;;  %1012 = vpow2.f32 %v672_v37 }
 0x3b3   : > { %v549_v30 = vsel %vm278_vm2, %v1007_v29, 0.0 }
 0x3b4   : > { %550 = vadd.xlane.f32.xlu0 %v549_v30 }
 0x3b6   : > { %v1009_v31 = vpop.eup %1008 }
 0x3b7   : > { %v552_v32 = vsel %vm282_vm3, %v1009_v31, 0.0 }
 0x3b8   : > { %553 = vadd.xlane.f32.xlu1 %v552_v32 }
 0x3ba   : > { %v1011_v33 = vpop.eup %1010 }
 0x3bb   : > { %v674_v34 = vsel %vm278_vm2, %v1011_v33, 0.0 }
 0x3bc   : > { %675 = vadd.xlane.f32.xlu0 %v674_v34  ;;  %v1013_v38 = vpop.eup %1012 }
 0x3bd   : > { %v677_v39 = vsel %vm282_vm3, %v1013_v38, 0.0 }
 0x3c9   : > { %560 = vrot.lane.b32.xlu1 %v1102_v22, %s1039_s26 }
 0x3d2   : > { %435 = vrot.lane.b32.xlu0 %v1102_v22, %s1036_s21 }
 0x3ed   : > { %678 = vadd.xlane.f32.xlu1 %v677_v39 }
 0x3fe   : > { %685 = vrot.lane.b32.xlu1 %v1102_v22, %s1037_s22 }
 0x439   : > { %v426_v41 = vpop.xlane.xlu0 %425 }
 0x43b   : > { %v429_v40 = vpop.xlane.xlu1 %428 }
 0x43c   : > { %1014 = vrcp.f32 %v429_v40 }
 0x43d   : > { %1016 = vrcp.f32 %v426_v41 }
 0x441   : > { %v551_v42 = vpop.xlane.xlu0 %550 }
 0x445   : > { %v554_v44 = vpop.xlane.xlu1 %553 }
 0x446   : > { %1018 = vrcp.f32 %v554_v44  ;;  %v1015_v47 = vpop.eup %1014 }
 0x447   : > { %1020 = vrcp.f32 %v551_v42  ;;  %v1017_v48 = vpop.eup %1016  ;;  %v433_v49 = vmul.f32 %v1015_v47, %v1005_v24 }
 0x448   : > { %v432_v52 = vmul.f32 %v1017_v48, %v1003_v19 }
 0x449   : > { %v676_v46 = vpop.xlane.xlu0 %675  ;;  %v561_v53 = vpop.permute.xlu1 %560 }
 0x44a   : > { %v434_v54 = vpack.c.bf16 %v433_v49, %v432_v52  ;;  %v566_v55 = vand.u32 %v561_v53, %v1105_v25  ;;  %1022 = vrcp.f32 %v676_v46 }
 0x44d   : > { %v436_v50 = vpop.permute.xlu0 %435 }
 0x44e   : > { %v441_v51 = vand.u32 %v436_v50, %v1105_v25 }
 0x450   : > { %930 = vmatpush3.bf16.msra.mxu0 %v441_v51  ;;  %v1019_v22 = vpop.eup %1018 }
 0x451   : > { %941 = vmatprep.subr.bf16.mxu0 %v1034_v0  ;;  %v1021_v56 = vpop.eup %1020  ;;  %v558_v57 = vmul.f32 %v1019_v22, %v1009_v31 }
 0x452   : > { %v557_v58 = vmul.f32 %v1021_v56, %v1007_v29 }
 0x453   : > { %932 = vmatmul.mubr.msk.bf16.vlgmr.msra.gmra.mrb[4].mxu0 %vm278_vm2, %v434_v54 }
 0x454   : > { %942 = vmatpush3.bf16.msra.mxu0 %v566_v55  ;;  %943 = vmatprep.mubr.msk.bf16.mxu0 %vm1035_vm0, %v1034_v0  ;;  %v559_v59 = vpack.c.bf16 %v558_v57, %v557_v58  ;;  %v1023_v63 = vpop.eup %1022 }
 0x455   : > { %953 = vmatprep.subr.bf16.mxu0 %v1034_v0  ;;  %v682_v2 = vmul.f32 %v1023_v63, %v1011_v33  ;;  %v779_v33 = vld [vmem:[%s210_s5 + $0x4] sm:$0x1] }
 0x45b   : > { %944 = vmatmul.mubr.msk.bf16.vlgmr.msra.gmra.mrb[8].mxu0 %vm278_vm2, %v559_v59 }
 0x45c   : > { %955 = vmatprep.mubr.msk.bf16.mxu0 %vm1035_vm0, %v1034_v0 }
 0x47a   : > { %v679_v60 = vpop.xlane.xlu1 %678 }
 0x47b   : > { %1024 = vrcp.f32 %v679_v60 }
 0x47e   : > { %v686_v61 = vpop.permute.xlu1 %685 }
 0x47f   : > { %v691_v62 = vand.u32 %v686_v61, %v1105_v25 }
 0x481   : > { %954 = vmatpush3.bf16.msra.mxu0 %v691_v62 }
 0x485   : > { %v1025_v1 = vpop.eup %1024 }
 0x486   : > { %v683_v3 = vmul.f32 %v1025_v1, %v1013_v38 }
 0x488   : > { %v684_v4 = vpack.c.bf16 %v683_v3, %v682_v2 }
 0x48a   : > { %956 = vmatmul.mubr.msk.bf16.vlgmr.msra.gmra.mrb[12].mxu0 %vm278_vm2, %v684_v4 }
 0x526   : > { %v477_v5 = vpop.f32.mrb[4].mxu0 }
 0x527   : > { %v933_v6 = vpop.f32.mrb[5].mxu0 }
 0x528   : > { %v480_v7 = vpop.f32.mrb[6].mxu0 }
 0x529   : > { %v976_v8 = vpack.i.bf16 %v477_v5, %v480_v7  ;;  %v934_v9 = vpop.f32.mrb[7].mxu0 }
 0x52b   : > { %977 = vrot.lane.b32.xlu1 %v976_v8, %s1040_s27 }
 0x52e   : > { %v602_v0 = vpop.f32.mrb[8].mxu0 }
 0x52f   : > { %v945_v10 = vpop.f32.mrb[9].mxu0 }
 0x530   : > { %v605_v11 = vpop.f32.mrb[10].mxu0 }
 0x531   : > { %v981_v12 = vpack.i.bf16 %v602_v0, %v605_v11  ;;  %v946_v25 = vpop.f32.mrb[11].mxu0 }
 0x533   : > { %982 = vrot.lane.b32.xlu0 %v981_v12, %s1041_s28 }
 0x55d   : > { %v727_v13 = vpop.f32.mrb[12].mxu0 }
 0x55e   : > { %v957_v14 = vpop.f32.mrb[13].mxu0 }
 0x55f   : > { %v730_v15 = vpop.f32.mrb[14].mxu0 }
 0x560   : > { %v986_v16 = vpack.i.bf16 %v727_v13, %v730_v15  ;;  %v958_v17 = vpop.f32.mrb[15].mxu0 }
 0x562   : > { %987 = vrot.lane.b32.xlu1 %v986_v16, %s1042_s29 }
 0x59d   : > { %v978_v18 = vpop.permute.xlu1 %977 }
 0x59e   : > { %v980_v20 = vunpack.i.h.bf16 %v978_v18  ;;  %v979_v21 = vunpack.i.l.bf16 %v978_v18 }
 0x5a0   : > { %v758_v27 = vsel %vm228_vm1, %v1128_v43, %v980_v20  ;;  %v759_v28 = vsel %vm228_vm1, %v1130_v45, %v979_v21 }
 0x5a5   : > { %v983_v19 = vpop.permute.xlu0 %982 }
 0x5a6   : > { %v985_v23 = vunpack.i.h.bf16 %v983_v19  ;;  %v984_v24 = vunpack.i.l.bf16 %v983_v19 }
 0x5a8   : > { %v761_v31 = vsel %vm760_vm6, %v758_v27, %v985_v23  ;;  %v762_v32 = vsel %vm760_vm6, %v759_v28, %v984_v24 }
 0x5d4   : > { %v988_v26 = vpop.permute.xlu1 %987 }
 0x5d5   : > { %v990_v29 = vunpack.i.h.bf16 %v988_v26  ;;  %v989_v30 = vunpack.i.l.bf16 %v988_v26 }
 0x5d7   : > { %v764_v34 = vsel %vm763_vm7, %v761_v31, %v990_v29  ;;  %v765_v35 = vsel %vm763_vm7, %v762_v32, %v989_v30 }
 0x5d8   : > { %v893_v36 = vpack.c.bf16 %v764_v34, %v764_v34  ;;  %v894_v37 = vpack.c.bf16 %v765_v35, %v765_v35 }
 0x5da   : > { %775 = vst.msk [vmem:[%s210_s5] sm:$0xf] %vm774_vm10, %v893_v36  ;;  %v780_v38 = vsel %vm778_vm11, %v894_v37, %v779_v33 }
 0x5db   : > { %781 = vst [vmem:[%s210_s5 + $0x4] sm:$0x1] %v780_v38 }
 0x5dc PF: > { %s13_s12 = sadd.s32 1, %s1032_s12  }
 0x5dd   : > { %p10_p4 = scmp.ge.s32.totalorder %s13_s12, 4  }
 0x5df   :  { %12 = sbr.rel (!%p10_p4) target bundleno = 1 (0x1), region = 68 }

// kernel: point_vit_forward.19
= control target key start
LH: loop header
LB: loop body
LE: loop exit
PB: predicated region body
PF: predicated region fallthrough
CT: control target
= control target key end

     0   :  { %vm24_vm0 = vcmask 254976   ;;  %s244_s0 = inlined_call_operand.vmem [shape: bf16[2,32], index: 0, kind: input, shape index: {}]   ;;  %s245_s1 = inlined_call_operand.vmem [shape: bf16[1,32], index: 1, kind: input, shape index: {}]   ;;  %s246_s2 = inlined_call_operand.vmem [shape: bf16[1,32], index: 2, kind: input, shape index: {}]   ;;  %s247_s3 = inlined_call_operand.vmem [shape: bf16[32,128], index: 3, kind: input, shape index: {}]   ;;  %s248_s4 = inlined_call_operand.vmem [shape: bf16[1,128], index: 4, kind: input, shape index: {}]   ;;  %s249_s5 = inlined_call_operand.hbm [shape: bf16[2,128], index: 5, kind: output, shape index: {}]  }
   0x1   :  { %v22_v0 = vld [vmem:[%s244_s0] sm:$0x1] }
   0x2   :  { %v23_v1 = vunpack.c.l.bf16 %v22_v0 }
   0x3   :  { %10 = vsyncpa [#allocation3], 0  ;;  %v153_v8 = vld [vmem:[%s247_s3] sm:$0xff]   ;;  %v181_v9 = vmov 0.0   ;;  %v154_v10 = vld [vmem:[%s247_s3 + $0x8] sm:$0xff]   ;;  %vm182_vm1 = vmmov 0   ;;  %v41_v13 = vlaneseq }
   0x4   :  { %v25_v2 = vsel %vm24_vm0, %v23_v1, 0.0  ;;  %142 = vmatprep.subr.bf16.mxu0 %v181_v9  ;;  %146 = vmatprep.mubr.msk.bf16.mxu0 %vm182_vm1, %v181_v9  ;;  %v39_v16 = vld [vmem:[%s245_s1] sm:$0x1]  ;;  %vm76_vm2 = vcmask 261120   ;;  %s183_s1 = smov [#allocation2]  }
   0x5   :  { %26 = vadd.xlane.f32.xlu0 %v25_v2  ;;  %143 = vmatpush3.bf16.msra.mxu0 %v153_v8  ;;  %v42_v15 = vshrl.u32 %v41_v13, 7  ;;  %v46_v17 = vld [vmem:[%s246_s2] sm:$0x1]  ;;  %v40_v18 = vunpack.c.l.bf16 %v39_v16  ;;  %s128_s2 = sshll.u32 %s183_s1, 4  ;;  %s129_s2 = int_to_ptr.vmem [resolvable:$true] %s128_s2 }
   0x6   :  { %144 = vmatprep.subr.bf16.mxu0 %v181_v9  ;;  %v47_v20 = vunpack.c.l.bf16 %v46_v17  ;;  %v58_v28 = vld [vmem:[%s248_s4] sm:$0x1]  ;;  %s157_s28 = scalar_lea.vmem %s129_s2, 16  ;;  %s161_s29 = scalar_lea.vmem %s129_s2, 32 }
   0x7   :  { %v43_v19 = vsub.s32 0, %v42_v15  ;;  %v59_v29 = vunpack.c.l.bf16 %v58_v28  ;;  %p158_p0 = scmp.ne.s32.totalorder %s129_s2, %s157_s28  ;;  %p162_p1 = scmp.lt.s32.totalorder %s129_s2, %s129_s2 }
   0x8   :  { %p163_p2 = scmp.lt.s32.totalorder %s161_s29, %s157_s28 }
   0x9   :  { %145 = vmatpush3.bf16.msra.mxu0 %v154_v10  ;;  %v44_v21 = vrot.slane %v40_v18, %v43_v19  ;;  %v51_v24 = vrot.slane %v47_v20, %v43_v19  ;;  %v63_v30 = vrot.slane %v59_v29, %v43_v19 }
   0xa   :  { %p164_p3 = por %p163_p2, %p162_p1 }
   0xc   :  { %p165_p4 = pnand %p164_p3, %p158_p0 }
  0x92   :  { %v27_v3 = vpop.xlane.xlu0 %26 }
  0x93   :  { %v29_v4 = vmul.f32 0.03125, %v27_v3 }
  0x95   :  { %v30_v5 = vsub.f32 %v23_v1, %v29_v4 }
  0x97   :  { %v31_v6 = vmul.f32 %v30_v5, %v30_v5 }
  0x99   :  { %v32_v7 = vsel %vm24_vm0, %v31_v6, 0.0 }
  0x9a   :  { %33 = vadd.xlane.f32.xlu0 %v32_v7 }
 0x127   :  { %v34_v11 = vpop.xlane.xlu0 %33 }
 0x128   :  { %v35_v12 = vmul.f32 0.03125, %v34_v11 }
 0x12a   :  { %v36_v14 = vadd.f32 1e-05, %v35_v12 }
 0x12c   :  { %155 = vrsqrt.f32 %v36_v14 }
 0x136   :  { %v156_v22 = vpop.eup %155 }
 0x137   :  { %v38_v23 = vmul.f32 %v156_v22, %v30_v5 }
 0x139   :  { %v45_v25 = vmul.f32 %v44_v21, %v38_v23 }
 0x13b   :  { %v52_v26 = vadd.f32 %v51_v24, %v45_v25 }
 0x13d   :  { %v53_v27 = vpack.c.bf16 %v52_v26, %v52_v26 }
 0x13f   :  { %147 = vmatmul.mubr.msk.bf16.vlgmr.msra.gmra.mrb[0].mxu0 %vm76_vm2, %v53_v27 }
 0x212   :  { %v114_v31 = vpop.f32.mrb[0].mxu0 }
 0x213   :  { %v115_v32 = vadd.f32 %v114_v31, %v63_v30  ;;  %v148_v33 = vpop.f32.mrb[1].mxu0 }
 0x214   :  { %v117_v34 = vpop.f32.mrb[2].mxu0 }
 0x215   :  { %v120_v35 = vpack.c.bf16 %v115_v32, %v115_v32  ;;  %v149_v36 = vpop.f32.mrb[3].mxu0 }
 0x217   :  { %121 = vst [vmem:[#allocation2] sm:$0x1] %v120_v35 }
 0x218   :  { %168 = shalt.err (!%p165_p4)
}
 0x219   :  { %s169_s6 = scalar_lea.hbm %s249_s5, 16 }
 0x21a   :  { %p170_p5 = scmp.ne.s32.totalorder %s249_s5, %s169_s6  ;;  %p173_p6 = scmp.lt.u32.totalorder %s169_s6, %s249_s5 }
 0x21c   :  { %p175_p7 = pnand %p173_p6, %p170_p5 }
 0x21e   :  { %178 = shalt.err (!%p175_p7)
}
 0x21f   :  { %131 = dma.vmem_to_hbm [thread:$0]  %s129_s2, 16, %s249_s5, [#allocation3]  }
 0x220   :  { %179 = dma.done.wait [#allocation3], 16  }
 0x221   :  { %180 = vsyncadd [#allocation3], 4294967280 }
 0x222   :  { %135 = vsyncpa [#allocation3], 1 }

// kernel: point_vit_forward.14
= control target key start
LH: loop header
LB: loop body
LE: loop exit
PB: predicated region body
PF: predicated region fallthrough
CT: control target
= control target key end

     0   :  { %vm39_vm0 = vcmask 261120   ;;  %vm46_vm1 = vcmask 254976   ;;  %v83_v32 = vlaneseq  ;;  %vm220_vm2 = vcmask 130048   ;;  %s609_s0 = inlined_call_operand.vmem [shape: bf16[18,32], index: 0, kind: input, shape index: {}]   ;;  %s610_s3 = inlined_call_operand.vmem [shape: bf16[32,16], index: 3, kind: input, shape index: {}]   ;;  %s611_s1 = inlined_call_operand.vmem [shape: bf16[1,32], index: 1, kind: input, shape index: {}]   ;;  %s612_s2 = inlined_call_operand.vmem [shape: bf16[1,32], index: 2, kind: input, shape index: {}]   ;;  %s613_s5 = inlined_call_operand.vmem [shape: bf16[16,32], index: 5, kind: input, shape index: {}]   ;;  %s614_s4 = inlined_call_operand.vmem [shape: bf16[1,16], index: 4, kind: input, shape index: {}]   ;;  %s615_s7 = inlined_call_operand.vmem [shape: bf16[32,32], index: 7, kind: input, shape index: {}]   ;;  %s616_s6 = inlined_call_operand.vmem [shape: bf16[1,32], index: 6, kind: input, shape index: {}]   ;;  %s617_s8 = inlined_call_operand.vmem [shape: bf16[1,32], index: 8, kind: input, shape index: {}]   ;;  %s618_s9 = inlined_call_operand.vmem [shape: bf16[18,32], index: 9, kind: output, shape index: {}]  }
   0x1   :  { %v423_v0 = vld [vmem:[%s609_s0] sm:$0xff]   ;;  %v35_v1 = vld [vmem:[%s609_s0 + $0x8] sm:$0x1]  ;;  %vm399_vm3 = vcmask 253952   ;;  %vm396_vm4 = vcmask 257024  }
   0x2   :  { %v538_v2 = vunpack.c.l.bf16 %v423_v0  ;;  %v540_v3 = vunpack.c.l.bf16 %v35_v1  ;;  %v542_v4 = vunpack.c.h.bf16 %v423_v0  ;;  %v459_v23 = vld [vmem:[%s610_s3] sm:$0xff]   ;;  %v460_v24 = vld [vmem:[%s610_s3 + $0x8] sm:$0xff]   ;;  %v84_v35 = vshrl.u32 %v83_v32, 7 }
   0x3   :  { %437 = vmatprep.subr.bf16.mxu0 %v459_v23  ;;  %v81_v36 = vld [vmem:[%s611_s1] sm:$0x1] }
   0x4   :  { %v40_v5 = vsel %vm39_vm0, %v538_v2, 0.0  ;;  %v47_v6 = vsel %vm46_vm1, %v540_v3, 0.0  ;;  %v43_v7 = vsel %vm39_vm0, %v542_v4, 0.0  ;;  %438 = vmatpush3.bf16.msra.mxu0 %v459_v23  ;;  %v82_v37 = vunpack.c.l.bf16 %v81_v36  ;;  %v90_v39 = vld [vmem:[%s612_s2] sm:$0x1] }
   0x5   :  { %41 = vadd.xlane.f32.xlu0 %v40_v5  ;;  %48 = vadd.xlane.f32.xlu1 %v47_v6  ;;  %v565_v38 = vsub.s32 0, %v84_v35  ;;  %v91_v43 = vunpack.c.l.bf16 %v90_v39  ;;  %v461_v57 = vld [vmem:[%s613_s5] sm:$0xff]  }
   0x6   :  { %439 = vmatprep.subr.bf16.mxu0 %v460_v24  ;;  %445 = vmatprep.subr.bf16.mxu1 %v461_v57  ;;  %v105_v58 = vld [vmem:[%s614_s4] sm:$0x1] }
   0x7   :  { %v86_v42 = vrot.slane %v82_v37, %v565_v38  ;;  %v95_v49 = vrot.slane %v91_v43, %v565_v38  ;;  %446 = vmatpush3.bf16.msra.mxu1 %v461_v57  ;;  %v106_v59 = vunpack.c.l.bf16 %v105_v58  ;;  %v462_v36 = vld [vmem:[%s615_s7] sm:$0xff]   ;;  %v463_v37 = vld [vmem:[%s615_s7 + $0x8] sm:$0xff]  }
   0x8   :  { %440 = vmatpush3.bf16.msra.mxu0 %v460_v24  ;;  %451 = vmatprep.subr.bf16.mxu1 %v462_v36  ;;  %v208_v39 = vld [vmem:[%s616_s6] sm:$0x1] }
   0x9   :  { %44 = vadd.xlane.f32.xlu0 %v43_v7  ;;  %v110_v60 = vrot.slane %v106_v59, %v565_v38 }
  0x92   :  { %v42_v8 = vpop.xlane.xlu0 %41  ;;  %v49_v9 = vpop.xlane.xlu1 %48 }
  0x93   :  { %v51_v10 = vmul.f32 0.03125, %v42_v8  ;;  %v53_v11 = vmul.f32 0.03125, %v49_v9 }
  0x95   :  { %v54_v12 = vsub.f32 %v538_v2, %v51_v10  ;;  %v56_v13 = vsub.f32 %v540_v3, %v53_v11 }
  0x96   :  { %v45_v14 = vpop.xlane.xlu0 %44 }
  0x97   :  { %v52_v15 = vmul.f32 0.03125, %v45_v14  ;;  %v57_v16 = vmul.f32 %v54_v12, %v54_v12  ;;  %v59_v17 = vmul.f32 %v56_v13, %v56_v13 }
  0x99   :  { %v55_v18 = vsub.f32 %v542_v4, %v52_v15  ;;  %v60_v19 = vsel %vm39_vm0, %v57_v16, 0.0  ;;  %v66_v20 = vsel %vm46_vm1, %v59_v17, 0.0 }
  0x9a   :  { %61 = vadd.xlane.f32.xlu1 %v60_v19 }
  0x9b   :  { %v58_v21 = vmul.f32 %v55_v18, %v55_v18 }
  0x9d   :  { %v63_v22 = vsel %vm39_vm0, %v58_v21, 0.0 }
  0x9e   :  { %67 = vadd.xlane.f32.xlu1 %v66_v20  ;;  %64 = vadd.xlane.f32.xlu0 %v63_v22 }
 0x127   :  { %v62_v25 = vpop.xlane.xlu1 %61 }
 0x128   :  { %v69_v26 = vmul.f32 0.03125, %v62_v25 }
 0x12a   :  { %v72_v27 = vadd.f32 1e-05, %v69_v26 }
 0x12b   :  { %v68_v28 = vpop.xlane.xlu1 %67  ;;  %v65_v29 = vpop.xlane.xlu0 %64 }
 0x12c   :  { %464 = vrsqrt.f32 %v72_v27  ;;  %v71_v30 = vmul.f32 0.03125, %v68_v28  ;;  %v70_v31 = vmul.f32 0.03125, %v65_v29 }
 0x12e   :  { %v74_v33 = vadd.f32 1e-05, %v71_v30  ;;  %v73_v34 = vadd.f32 1e-05, %v70_v31 }
 0x130   :  { %466 = vrsqrt.f32 %v74_v33 }
 0x131   :  { %468 = vrsqrt.f32 %v73_v34 }
 0x136   :  { %v465_v40 = vpop.eup %464 }
 0x137   :  { %v78_v41 = vmul.f32 %v465_v40, %v54_v12  ;;  %v209_v40 = vunpack.c.l.bf16 %v208_v39 }
 0x139   :  { %v87_v48 = vmul.f32 %v86_v42, %v78_v41  ;;  %v213_v41 = vrot.slane %v209_v40, %v565_v38 }
 0x13a   :  { %v467_v44 = vpop.eup %466 }
 0x13b   :  { %v469_v45 = vpop.eup %468  ;;  %v80_v46 = vmul.f32 %v467_v44, %v56_v13  ;;  %v96_v53 = vadd.f32 %v95_v49, %v87_v48 }
 0x13c   :  { %v79_v47 = vmul.f32 %v469_v45, %v55_v18 }
 0x13d   :  { %v89_v50 = vmul.f32 %v86_v42, %v80_v46 }
 0x13e   :  { %v88_v51 = vmul.f32 %v86_v42, %v79_v47 }
 0x13f   :  { %v98_v52 = vadd.f32 %v95_v49, %v89_v50 }
 0x140   :  { %v97_v54 = vadd.f32 %v95_v49, %v88_v51 }
 0x141   :  { %v100_v55 = vpack.c.bf16 %v98_v52, %v98_v52 }
 0x142   :  { %v99_v56 = vpack.c.bf16 %v97_v54, %v96_v53 }
 0x144   :  { %441 = vmatprep.mubr.msk.bf16.mxu0 %vm39_vm0, %v99_v56 }
 0x145   :  { %442 = vmatmul.mubr.msk.bf16.vlgmr.msra.gmra.mrb[0].mxu0 %vm39_vm0, %v100_v55 }
 0x218   :  { %v443_v61 = vpop.f32.mrb[0].mxu0 }
 0x219   :  { %v172_v62 = vadd.f32 %v443_v61, %v110_v60  ;;  %v163_v63 = vpop.f32.mrb[1].mxu0 }
 0x21a   :  { %v164_v0 = vadd.f32 %v163_v63, %v110_v60  ;;  %v444_v1 = vpop.f32.mrb[2].mxu0 }
 0x21b   :  { %v179_v5 = vmul.f32 %v172_v62, %v172_v62  ;;  %v166_v6 = vpop.f32.mrb[3].mxu0 }
 0x21c   :  { %v177_v7 = vmul.f32 %v164_v0, %v164_v0  ;;  %v167_v8 = vadd.f32 %v166_v6, %v110_v60 }
 0x21d   :  { %v182_v9 = vmul.f32 %v179_v5, %v172_v62 }
 0x21e   :  { %v180_v10 = vmul.f32 %v177_v7, %v164_v0  ;;  %v178_v11 = vmul.f32 %v167_v8, %v167_v8 }
 0x21f   :  { %v185_v12 = vmul.f32 0.044715, %v182_v9 }
 0x220   :  { %v183_v13 = vmul.f32 0.044715, %v180_v10  ;;  %v181_v14 = vmul.f32 %v178_v11, %v167_v8 }
 0x221   :  { %v188_v15 = vadd.f32 %v185_v12, %v172_v62 }
 0x222   :  { %v186_v16 = vadd.f32 %v183_v13, %v164_v0  ;;  %v184_v17 = vmul.f32 0.044715, %v181_v14 }
 0x223   :  { %v191_v18 = vmul.f32 0.7978846, %v188_v15 }
 0x224   :  { %v189_v19 = vmul.f32 0.7978846, %v186_v16  ;;  %v187_v20 = vadd.f32 %v184_v17, %v167_v8  ;;  %v308_v17 = vld [vmem:[%s617_s8] sm:$0x1] }
 0x225   :  { %470 = vtanh.f32 %v191_v18  ;;  %v309_v18 = vunpack.c.l.bf16 %v308_v17 }
 0x226   :  { %v190_v21 = vmul.f32 0.7978846, %v187_v20  ;;  %472 = vtanh.f32 %v189_v19 }
 0x227   :  { %v313_v19 = vrot.slane %v309_v18, %v565_v38 }
 0x228   :  { %474 = vtanh.f32 %v190_v21 }
 0x22f   :  { %v471_v22 = vpop.eup %470 }
 0x230   :  { %v473_v23 = vpop.eup %472  ;;  %v197_v24 = vadd.f32 1.0, %v471_v22 }
 0x231   :  { %v195_v25 = vadd.f32 1.0, %v473_v23 }
 0x232   :  { %v475_v26 = vpop.eup %474  ;;  %v200_v27 = vmul.f32 0.5, %v197_v24 }
 0x233   :  { %v196_v28 = vadd.f32 1.0, %v475_v26  ;;  %v198_v29 = vmul.f32 0.5, %v195_v25 }
 0x234   :  { %v203_v31 = vmul.f32 %v200_v27, %v172_v62 }
 0x235   :  { %v199_v30 = vmul.f32 0.5, %v196_v28  ;;  %v201_v32 = vmul.f32 %v198_v29, %v164_v0 }
 0x236   :  { %v205_v35 = vpack.c.bf16 %v203_v31, %v203_v31 }
 0x237   :  { %v202_v33 = vmul.f32 %v199_v30, %v167_v8 }
 0x239   :  { %v204_v34 = vpack.c.bf16 %v202_v33, %v201_v32 }
 0x23b   :  { %447 = vmatprep.mubr.msk.bf16.mxu1 %vm220_vm2, %v204_v34 }
 0x23c   :  { %448 = vmatmul.mubr.msk.bf16.vlgmr.msra.gmra.mrb[0].mxu1 %vm220_vm2, %v205_v35 }
 0x23d   :  { %452 = vmatpush3.bf16.msra.mxu1 %v462_v36 }
 0x23e   :  { %453 = vmatprep.subr.bf16.mxu1 %v463_v37 }
 0x241   :  { %454 = vmatpush3.bf16.msra.mxu1 %v463_v37 }
 0x30f   :  { %v449_v42 = vpop.f32.mrb[0].mxu1 }
 0x310   :  { %v270_v43 = vadd.f32 %v449_v42, %v213_v41  ;;  %v261_v44 = vpop.f32.mrb[1].mxu1 }
 0x311   :  { %v262_v45 = vadd.f32 %v261_v44, %v213_v41  ;;  %v450_v46 = vpop.f32.mrb[2].mxu1 }
 0x312   :  { %v277_v47 = vmul.f32 %v270_v43, %v270_v43  ;;  %v264_v48 = vpop.f32.mrb[3].mxu1 }
 0x313   :  { %v275_v49 = vmul.f32 %v262_v45, %v262_v45  ;;  %v265_v50 = vadd.f32 %v264_v48, %v213_v41 }
 0x314   :  { %v280_v51 = vmul.f32 %v277_v47, %v270_v43 }
 0x315   :  { %v278_v52 = vmul.f32 %v275_v49, %v262_v45  ;;  %v276_v53 = vmul.f32 %v265_v50, %v265_v50 }
 0x316   :  { %v283_v54 = vmul.f32 0.044715, %v280_v51 }
 0x317   :  { %v281_v55 = vmul.f32 0.044715, %v278_v52  ;;  %v279_v56 = vmul.f32 %v276_v53, %v265_v50 }
 0x318   :  { %v286_v57 = vadd.f32 %v283_v54, %v270_v43 }
 0x319   :  { %v284_v58 = vadd.f32 %v281_v55, %v262_v45  ;;  %v282_v59 = vmul.f32 0.044715, %v279_v56 }
 0x31a   :  { %v289_v60 = vmul.f32 0.7978846, %v286_v57 }
 0x31b   :  { %v287_v61 = vmul.f32 0.7978846, %v284_v58  ;;  %v285_v62 = vadd.f32 %v282_v59, %v265_v50 }
 0x31c   :  { %476 = vtanh.f32 %v289_v60 }
 0x31d   :  { %478 = vtanh.f32 %v287_v61  ;;  %v288_v63 = vmul.f32 0.7978846, %v285_v62 }
 0x31f   :  { %480 = vtanh.f32 %v288_v63 }
 0x326   :  { %v477_v0 = vpop.eup %476 }
 0x327   :  { %v479_v1 = vpop.eup %478  ;;  %v295_v5 = vadd.f32 1.0, %v477_v0 }
 0x328   :  { %v293_v6 = vadd.f32 1.0, %v479_v1 }
 0x329   :  { %v481_v7 = vpop.eup %480  ;;  %v298_v8 = vmul.f32 0.5, %v295_v5 }
 0x32a   :  { %v296_v9 = vmul.f32 0.5, %v293_v6  ;;  %v294_v10 = vadd.f32 1.0, %v481_v7 }
 0x32b   :  { %v301_v12 = vmul.f32 %v298_v8, %v270_v43 }
 0x32c   :  { %v297_v11 = vmul.f32 0.5, %v294_v10  ;;  %v299_v13 = vmul.f32 %v296_v9, %v262_v45 }
 0x32d   :  { %v303_v16 = vpack.c.bf16 %v301_v12, %v301_v12 }
 0x32e   :  { %v300_v14 = vmul.f32 %v297_v11, %v265_v50 }
 0x330   :  { %v302_v15 = vpack.c.bf16 %v300_v14, %v299_v13 }
 0x332   :  { %455 = vmatprep.mubr.msk.bf16.mxu1 %vm39_vm0, %v302_v15 }
 0x333   :  { %456 = vmatmul.mubr.msk.bf16.vlgmr.msra.gmra.mrb[4].mxu1 %vm39_vm0, %v303_v16 }
 0x406   :  { %v457_v20 = vpop.f32.mrb[4].mxu1 }
 0x407   :  { %v375_v21 = vadd.f32 %v457_v20, %v313_v19  ;;  %v366_v22 = vpop.f32.mrb[5].mxu1 }
 0x408   :  { %v367_v23 = vadd.f32 %v366_v22, %v313_v19  ;;  %v458_v24 = vpop.f32.mrb[6].mxu1 }
 0x409   :  { %v382_v25 = vadd.f32 %v375_v21, %v540_v3  ;;  %v369_v26 = vpop.f32.mrb[7].mxu1 }
 0x40a   :  { %v380_v27 = vadd.f32 %v538_v2, %v367_v23  ;;  %v370_v28 = vadd.f32 %v369_v26, %v313_v19 }
 0x40b   :  { %v421_v29 = vpack.c.bf16 %v382_v25, %v382_v25 }
 0x40c   :  { %v419_v30 = vpack.c.bf16 %v380_v27, %v380_v27  ;;  %v381_v31 = vadd.f32 %v542_v4, %v370_v28 }
 0x40d   :  { %400 = vst.msk [vmem:[%s618_s9 + $0x8] sm:$0x1] %vm399_vm3, %v421_v29 }
 0x40e   :  { %397 = vst.msk [vmem:[%s618_s9] sm:$0xf] %vm396_vm4, %v419_v30  ;;  %v420_v38 = vpack.c.bf16 %v381_v31, %v381_v31 }
 0x410   :  { %398 = vst.msk [vmem:[%s618_s9 + $0x4] sm:$0xf] %vm396_vm4, %v420_v38 }

</bundles_post_ra>
